<compile_context>
chip_gen: v6e
topology: v6e:2x2x1
jax: 0.10.0
libtpu: 0.0.40
codegen_flags: <defaults>
</compile_context>

<pallas_src>
import functools

import jax
import jax.numpy as jnp
from jax import lax
from jax.experimental import pallas as pl
from jax.experimental.pallas import tpu as pltpu


# Row indices of the packed per-layer vector parameters (see init_params).
(_LN1_G, _LN1_B, _BQ, _BK, _BV, _BO, _LN2_G, _LN2_B, _B2) = range(9)
_N_VEC_ROWS = 9
# Row indices of the packed final parameters.
(_LNF_G, _LNF_B, _HEAD_B) = range(3)


def _layernorm(x, g, b, eps):
    mu = jnp.mean(x, axis=-1, keepdims=True)
    var = jnp.mean((x - mu) * (x - mu), axis=-1, keepdims=True)
    return (x - mu) * lax.rsqrt(var + eps) * g + b


# --------------------------------------------------------------------------- fused kernel

def _gpt_kernel(
    x_ref, pos_ref, wqkv_ref, wo_ref, w1_ref, w2_ref, b1_ref, vecs_ref,
    lnf_ref, head_w_ref,
    o_ref,
    state_ref, mask_ref,
    *, num_heads, eps,
):
    """One grid step = (batch block b, layer l).

    The residual stream for the whole batch block lives flattened as (Bt*T, E) in
    `state_ref` (VMEM, f32): initialized at l == 0, finalized (final LN + head) at
    l == L-1.
    """
    l = pl.program_id(1)
    num_layers = pl.num_programs(1)

    Bt, T, E = x_ref.shape
    M = Bt * T                      # flattened matmul M dimension (review #2)
    H = num_heads
    Dh = E // H
    scale = 1.0 / (Dh ** 0.5)

    # ---- init (once per batch block): residual stream = token + positional embedding,
    #      plus the additive causal mask (hoisted out of the layer loop, review #10).
    @pl.when(l == 0)
    def _():
        state_ref[...] = (x_ref[...] + pos_ref[...]).reshape(M, E)   # emb dropout = id
        row = lax.broadcasted_iota(jnp.int32, (T, T), 0)
        col = lax.broadcasted_iota(jnp.int32, (T, T), 1)
        mask_ref[...] = jnp.where(col <= row, 0.0, -1e30).astype(jnp.float32)

    x = state_ref[...]                              # (M, E) f32
    vecs = vecs_ref[0]                              # (9, E) f32 packed per-layer vectors
    qkv_w = wqkv_ref[0]                             # (3, E, E) bf16

    # ---------------- attention sub-block (pre-LN) ----------------
    h = _layernorm(x, vecs[_LN1_G:_LN1_G + 1], vecs[_LN1_B:_LN1_B + 1], eps)
    hb = h.astype(jnp.bfloat16)
    # Separate Q/K/V dots (weights stored (3, E, E)) avoid lane-boundary-crossing slices
    # of a fused (M, 3E) result (review #4).
    q = jnp.dot(hb, qkv_w[0], preferred_element_type=jnp.float32) + vecs[_BQ:_BQ + 1]
    k = jnp.dot(hb, qkv_w[1], preferred_element_type=jnp.float32) + vecs[_BK:_BK + 1]
    v = jnp.dot(hb, qkv_w[2], preferred_element_type=jnp.float32) + vecs[_BV:_BV + 1]

    # Single head relayout (static lane slices + major-axis concat; no minor-dim
    # transposes), then batched attention matmuls over ALL (batch, head) pairs at once
    # instead of a per-head Python loop (review #3).
    def split_heads(t):                              # (M, E) -> (H*Bt, T, Dh)
        t = t.reshape(Bt, T, E)
        return jnp.concatenate(
            [t[:, :, hh * Dh:(hh + 1) * Dh] for hh in range(H)], axis=0
        ).astype(jnp.bfloat16)

    qh, kh, vh = split_heads(q), split_heads(k), split_heads(v)     # (H*Bt, T, Dh)

    s = jnp.einsum("bqd,bkd->bqk", qh, kh,
                   preferred_element_type=jnp.float32) * scale      # (H*Bt, T, T)
    s = s + mask_ref[...][None]                                     # additive causal mask
    m = jnp.max(s, axis=-1, keepdims=True)
    p = jnp.exp(s - m)
    p = p * pl.reciprocal(jnp.sum(p, axis=-1, keepdims=True), approx=True)
    av = jnp.einsum("bqk,bkd->bqd", p.astype(jnp.bfloat16), vh,
                    preferred_element_type=jnp.float32)             # (H*Bt, T, Dh)
    attn = jnp.concatenate(
        [av[hh * Bt:(hh + 1) * Bt] for hh in range(H)], axis=-1     # (Bt, T, E)
    ).reshape(M, E)

    proj = jnp.dot(attn.astype(jnp.bfloat16), wo_ref[0],
                   preferred_element_type=jnp.float32) + vecs[_BO:_BO + 1]
    x = x + proj                                     # attn/resid dropout = identity (eval)

    # ---------------- MLP sub-block (pre-LN) ----------------
    h = _layernorm(x, vecs[_LN2_G:_LN2_G + 1], vecs[_LN2_B:_LN2_B + 1], eps)
    h1 = jnp.dot(h.astype(jnp.bfloat16), w1_ref[0],
                 preferred_element_type=jnp.float32) + b1_ref[0]     # (M, 4E)
    h1 = jax.nn.gelu(h1, approximate=True)  # TODO(synk): reference GPT may use exact erf GELU
    h2 = jnp.dot(h1.astype(jnp.bfloat16), w2_ref[0],
                 preferred_element_type=jnp.float32) + vecs[_B2:_B2 + 1]
    x = x + h2

    state_ref[...] = x

    # ---- finalize on last layer: final LayerNorm + linear head ----
    @pl.when(l == num_layers - 1)
    def _():
        lnf = lnf_ref[...]                           # (3, E)
        z = _layernorm(x, lnf[_LNF_G:_LNF_G + 1], lnf[_LNF_B:_LNF_B + 1], eps)
        out = jnp.dot(z.astype(jnp.bfloat16), head_w_ref[...],
                      preferred_element_type=jnp.float32) + lnf[_HEAD_B:_HEAD_B + 1]
        # NOTE: a (Bt, T*E) lane-dense slab store (review #8) was considered, but the
        # in-kernel sublane->lane repack costs about what the masked stores cost at this
        # size and the store happens only once per batch block; kept as (Bt, T, E).
        o_ref[...] = out.reshape(Bt, T, E).astype(o_ref.dtype)


def gpt_forward(params, x, num_heads, *, batch_block=None):
    """x: (B, T, E) f32 -> (B, T, E) f32.  Single fused pallas_call over grid (B//Bt, L)."""
    B, T, E = x.shape
    L = params["wqkv"].shape[0]
    num_blocks = params["pos_emb"].shape[0]
    assert T <= num_blocks, f"sequence length {T} exceeds positional table {num_blocks}"
    assert E % num_heads == 0

    if batch_block is None:
        # Single batch block maximizes per-layer weight-DMA amortization (v5e/v6e: 1 TC).
        # TODO(synk): on v7x (2 TensorCores) pass batch_block=B//2 so the "parallel" batch
        # axis has >= 2 blocks and both cores get work (review #6).
        batch_block = B
    assert B % batch_block == 0
    nb = B // batch_block

    pos = params["pos_emb"][:T]                      # (T, E)

    per_layer3 = lambda b, l: (l, 0, 0)              # noqa: E731
    shared2d = lambda b, l: (0, 0)                   # noqa: E731

    kernel = functools.partial(_gpt_kernel, num_heads=num_heads, eps=1e-5)

    return pl.pallas_call(
        kernel,
        out_shape=jax.ShapeDtypeStruct((B, T, E), jnp.float32),
        grid_spec=pltpu.PrefetchScalarGridSpec(
            num_scalar_prefetch=0,
            grid=(nb, L),
            in_specs=[
                pl.BlockSpec((batch_block, T, E), lambda b, l: (b, 0, 0)),    # x
                pl.BlockSpec((T, E), shared2d),                               # pos_emb
                pl.BlockSpec((1, 3, E, E), lambda b, l: (l, 0, 0, 0)),        # wq/wk/wv (bf16)
                pl.BlockSpec((1, E, E), per_layer3),                          # wo (bf16)
                pl.BlockSpec((1, E, 4 * E), per_layer3),                      # w1 (bf16)
                pl.BlockSpec((1, 4 * E, E), per_layer3),                      # w2 (bf16)
                pl.BlockSpec((1, 1, 4 * E), per_layer3),                      # b1
                pl.BlockSpec((1, _N_VEC_ROWS, E), per_layer3),                # packed vectors
                pl.BlockSpec((3, E), shared2d),                               # lnf_g/lnf_b/head_b
                pl.BlockSpec((E, E), shared2d),                               # head_w (bf16)
            ],
            out_specs=pl.BlockSpec((batch_block, T, E), lambda b, l: (b, 0, 0)),
            scratch_shapes=[
                pltpu.VMEM((batch_block * T, E), jnp.float32),   # residual stream (M, E)
                pltpu.VMEM((T, T), jnp.float32),                 # additive causal mask
            ],
        ),
        compiler_params=pltpu.CompilerParams(
            dimension_semantics=("parallel", "arbitrary"),
            # NOTE: at E=64 the double-buffered per-layer weight set is ~0.2 MiB, far below
            # every generation's VMEM limit.  If E/T are scaled up, set vmem_limit_bytes
            # and/or pipeline_mode=pl.Buffered(1) on w1/w2 (review #7, v7x has 64 MiB VMEM).
        ),
    )(
        x, pos,
        params["wqkv"], params["wo"], params["w1"], params["w2"],
        params["b1"], params["vecs"], params["lnf"], params["head_w"],
    )


# ------------------------------------------------------------------------------ parameters

def init_params(key, num_layers, num_blocks, embedding_dim):
    E, L = embedding_dim, num_layers
    keys = jax.random.split(key, 6)

    def w_bf16(k, shape, scale=0.02):
        return (scale * jax.random.normal(k, shape)).astype(jnp.bfloat16)

    # Packed per-layer vectors: rows [ln1_g, ln1_b, bq, bk, bv, bo, ln2_g, ln2_b, b2].
    vecs = jnp.zeros((L, _N_VEC_ROWS, E), jnp.float32)
    vecs = vecs.at[:, _LN1_G].set(1.0).at[:, _LN2_G].set(1.0)
    # Packed final params: rows [lnf_g, lnf_b, head_b].
    lnf = jnp.zeros((3, E), jnp.float32).at[_LNF_G].set(1.0)

    return {
        # positional embedding + all non-matmul params stay f32 (VPU path)
        "pos_emb": (0.02 * jax.random.normal(keys[0], (num_blocks, E))).astype(jnp.float32),
        # MXU weights stored bf16; Q/K/V kept separate along a leading axis of size 3
        "wqkv": w_bf16(keys[1], (L, 3, E, E)),
        "wo": w_bf16(keys[2], (L, E, E)),
        "w1": w_bf16(keys[3], (L, E, 4 * E)),
        "w2": w_bf16(keys[4], (L, 4 * E, E)),
        "b1": jnp.zeros((L, 1, 4 * E), jnp.float32),
        "vecs": vecs,
        "lnf": lnf,
        "head_w": w_bf16(keys[5], (E, E)),
    }


# ------------------------------------------------------------------------------ model glue

def transformer_forward(params, feats, num_heads):
    """Mirrors Transformer.forward: (B,S,C,H,W) -> (B,C,H,W) (last step's refined feats)."""
    B, S, C, H, W = feats.shape
    x = feats.reshape(B, S * C, H * W)
    refined = gpt_forward(params, x, num_heads)
    refined = refined.reshape(B, S, C, H, W)
    return refined[:, -1, :, :, :]


# ----------------------------------------------------------------------------------- main

if __name__ == "__main__":
    # small shapes consistent with the module: embedding_dim must equal H*W
    B, S, C, H, W = 2, 2, 4, 8, 8
    num_layers, num_heads, num_blocks = 2, 4, 16
    embedding_dim = H * W                          # 64

    key = jax.random.PRNGKey(0)
    pkey, xkey = jax.random.split(key)
    params = init_params(pkey, num_layers, num_blocks, embedding_dim)
    feats = jax.random.normal(xkey, (B, S, C, H, W), dtype=jnp.float32)

    fwd = jax.jit(functools.partial(transformer_forward, num_heads=num_heads))
    out = fwd(params, feats)
    jax.block_until_ready(out)

    assert out.shape == (B, C, H, W), out.shape
    assert bool(jnp.all(jnp.isfinite(out)))
    print("KERNEL_OK")
</pallas_src>

<mosaic_0001>
module attributes {stable_mosaic.version = 11 : i64} {
  func.func @_gpt_kernel(%arg0: i32, %arg1: i32, %arg2: memref<2x8x64xf32, #tpu.memory_space<vmem>>, %arg3: memref<8x64xf32, #tpu.memory_space<vmem>>, %arg4: memref<1x3x64x64xbf16, #tpu.memory_space<vmem>>, %arg5: memref<1x64x64xbf16, #tpu.memory_space<vmem>>, %arg6: memref<1x64x256xbf16, #tpu.memory_space<vmem>>, %arg7: memref<1x256x64xbf16, #tpu.memory_space<vmem>>, %arg8: memref<1x1x256xf32, #tpu.memory_space<vmem>>, %arg9: memref<1x9x64xf32, #tpu.memory_space<vmem>>, %arg10: memref<3x64xf32, #tpu.memory_space<vmem>>, %arg11: memref<64x64xbf16, #tpu.memory_space<vmem>>, %arg12: memref<2x8x64xf32, #tpu.memory_space<vmem>>, %arg13: memref<16x64xf32, #tpu.memory_space<vmem>>, %arg14: memref<8x8xf32, #tpu.memory_space<vmem>>) attributes {dimension_semantics = [#tpu.dimension_semantics<parallel>, #tpu.dimension_semantics<arbitrary>], iteration_bounds = array<i64: 1, 2>, scalar_prefetch = 0 : i64, scratch_operands = 2 : i64, tpu.core_type = #tpu.core_type<tc>, window_params = [{transform_indices = @transform_0, window_bounds = array<i64: 2, 8, 64>}, {pipeline_mode = #tpu.pipeline_mode<synchronous>, transform_indices = @transform_1, window_bounds = array<i64: 8, 64>}, {transform_indices = @transform_2, window_bounds = array<i64: 1, 3, 64, 64>}, {transform_indices = @transform_3, window_bounds = array<i64: 1, 64, 64>}, {transform_indices = @transform_4, window_bounds = array<i64: 1, 64, 256>}, {transform_indices = @transform_5, window_bounds = array<i64: 1, 256, 64>}, {transform_indices = @transform_6, window_bounds = array<i64: 1, 1, 256>}, {transform_indices = @transform_7, window_bounds = array<i64: 1, 9, 64>}, {pipeline_mode = #tpu.pipeline_mode<synchronous>, transform_indices = @transform_8, window_bounds = array<i64: 3, 64>}, {pipeline_mode = #tpu.pipeline_mode<synchronous>, transform_indices = @transform_9, window_bounds = array<i64: 64, 64>}, {transform_indices = @transform_10, window_bounds = array<i64: 2, 8, 64>}]} {
    %c0_i32 = arith.constant 0 : i32
    %0 = arith.cmpi eq, %arg1, %c0_i32 : i32
    %1 = arith.extui %0 : i1 to i32
    %c0_i32_0 = arith.constant 0 : i32
    %2 = arith.cmpi ne, %1, %c0_i32_0 : i32
    scf.if %2 {
      %c0_50 = arith.constant 0 : index
      %c0_51 = arith.constant 0 : index
      %c0_52 = arith.constant 0 : index
      %166 = vector.load %arg2[%c0_50, %c0_51, %c0_52] : memref<2x8x64xf32, #tpu.memory_space<vmem>>, vector<2x8x64xf32>
      %c0_53 = arith.constant 0 : index
      %c0_54 = arith.constant 0 : index
      %167 = vector.load %arg3[%c0_53, %c0_54] : memref<8x64xf32, #tpu.memory_space<vmem>>, vector<8x64xf32>
      %168 = vector.shape_cast %167 : vector<8x64xf32> to vector<1x8x64xf32>
      %169 = vector.broadcast %168 : vector<1x8x64xf32> to vector<2x8x64xf32>
      %170 = arith.addf %166, %169 : vector<2x8x64xf32>
      %171 = vector.shape_cast %170 : vector<2x8x64xf32> to vector<16x64xf32>
      %c0_55 = arith.constant 0 : index
      %c0_56 = arith.constant 0 : index
      %172 = vector.load %arg13[%c0_55, %c0_56] : memref<16x64xf32, #tpu.memory_space<vmem>>, vector<16x64xf32>
      tpu.vector_store %arg13[%c0_55, %c0_56], %171 {strides = array<i32>} : memref<16x64xf32, #tpu.memory_space<vmem>>, vector<16x64xf32>,
      %173 = tpu.iota {dimensions = array<i32: 0>} : vector<8x8xi32>
      %174 = tpu.iota {dimensions = array<i32: 1>} : vector<8x8xi32>
      %175 = arith.cmpi sle, %174, %173 : vector<8x8xi32>
      %cst_57 = arith.constant 0.000000e+00 : f32
      %cst_58 = arith.constant -1.000000e+30 : f32
      %176 = vector.broadcast %cst_57 : f32 to vector<8x8xf32>
      %177 = vector.broadcast %cst_58 : f32 to vector<8x8xf32>
      %178 = arith.select %175, %176, %177 : vector<8x8xi1>, vector<8x8xf32>
      %c0_59 = arith.constant 0 : index
      %c0_60 = arith.constant 0 : index
      %179 = vector.load %arg14[%c0_59, %c0_60] : memref<8x8xf32, #tpu.memory_space<vmem>>, vector<8x8xf32>
      tpu.vector_store %arg14[%c0_59, %c0_60], %178 {strides = array<i32>} : memref<8x8xf32, #tpu.memory_space<vmem>>, vector<8x8xf32>,
    } else {
    }
    %c0 = arith.constant 0 : index
    %c0_1 = arith.constant 0 : index
    %3 = vector.load %arg13[%c0, %c0_1] : memref<16x64xf32, #tpu.memory_space<vmem>>, vector<16x64xf32>
    %c0_2 = arith.constant 0 : index
    %c0_3 = arith.constant 0 : index
    %c0_4 = arith.constant 0 : index
    %4 = vector.load %arg9[%c0_2, %c0_3, %c0_4] : memref<1x9x64xf32, #tpu.memory_space<vmem>>, vector<1x9x64xf32>
    %5 = vector.shape_cast %4 : vector<1x9x64xf32> to vector<9x64xf32>
    %c0_5 = arith.constant 0 : index
    %c0_6 = arith.constant 0 : index
    %c0_7 = arith.constant 0 : index
    %c0_8 = arith.constant 0 : index
    %6 = vector.load %arg4[%c0_5, %c0_6, %c0_7, %c0_8] : memref<1x3x64x64xbf16, #tpu.memory_space<vmem>>, vector<1x3x64x64xbf16>
    %7 = vector.shape_cast %6 : vector<1x3x64x64xbf16> to vector<3x64x64xbf16>
    %8 = vector.extract_strided_slice %5 {offsets = [0, 0], sizes = [1, 64], strides = [1, 1]} : vector<9x64xf32> to vector<1x64xf32>
    %9 = vector.extract_strided_slice %5 {offsets = [1, 0], sizes = [1, 64], strides = [1, 1]} : vector<9x64xf32> to vector<1x64xf32>
    %cst = arith.constant dense<0.000000e+00> : vector<16xf32>
    %10 = vector.multi_reduction <add>, %3, %cst [1] : vector<16x64xf32> to vector<16xf32>
    %11 = vector.shape_cast %10 : vector<16xf32> to vector<16x1xf32>
    %cst_9 = arith.constant 6.400000e+01 : f32
    %12 = vector.broadcast %cst_9 : f32 to vector<16x1xf32>
    %13 = arith.divf %11, %12 : vector<16x1xf32>
    %14 = vector.broadcast %13 : vector<16x1xf32> to vector<16x64xf32>
    %15 = arith.subf %3, %14 : vector<16x64xf32>
    %16 = vector.broadcast %13 : vector<16x1xf32> to vector<16x64xf32>
    %17 = arith.subf %3, %16 : vector<16x64xf32>
    %18 = arith.mulf %15, %17 : vector<16x64xf32>
    %cst_10 = arith.constant dense<0.000000e+00> : vector<16xf32>
    %19 = vector.multi_reduction <add>, %18, %cst_10 [1] : vector<16x64xf32> to vector<16xf32>
    %20 = vector.shape_cast %19 : vector<16xf32> to vector<16x1xf32>
    %cst_11 = arith.constant 6.400000e+01 : f32
    %21 = vector.broadcast %cst_11 : f32 to vector<16x1xf32>
    %22 = arith.divf %20, %21 : vector<16x1xf32>
    %23 = vector.broadcast %13 : vector<16x1xf32> to vector<16x64xf32>
    %24 = arith.subf %3, %23 : vector<16x64xf32>
    %cst_12 = arith.constant 9.99999974E-6 : f32
    %25 = vector.broadcast %cst_12 : f32 to vector<16x1xf32>
    %26 = arith.addf %22, %25 : vector<16x1xf32>
    %27 = math.rsqrt %26 : vector<16x1xf32>
    %28 = vector.broadcast %27 : vector<16x1xf32> to vector<16x64xf32>
    %29 = arith.mulf %24, %28 : vector<16x64xf32>
    %30 = vector.broadcast %8 : vector<1x64xf32> to vector<16x64xf32>
    %31 = arith.mulf %29, %30 : vector<16x64xf32>
    %32 = vector.broadcast %9 : vector<1x64xf32> to vector<16x64xf32>
    %33 = arith.addf %31, %32 : vector<16x64xf32>
    %34 = arith.truncf %33 : vector<16x64xf32> to vector<16x64xbf16>
    %35 = vector.extract_strided_slice %7 {offsets = [0, 0, 0], sizes = [1, 64, 64], strides = [1, 1, 1]} : vector<3x64x64xbf16> to vector<1x64x64xbf16>
    %36 = vector.shape_cast %35 : vector<1x64x64xbf16> to vector<64x64xbf16>
    %cst_13 = arith.constant dense<0.000000e+00> : vector<16x64xf32>
    %37 = tpu.matmul %34, %36, %cst_13 {dimension_numbers = #tpu.dot_dimension_numbers<[1], [0], [0], [1], [0, 0, 1, 1], [], []>} : vector<16x64xbf16>, vector<64x64xbf16>, vector<16x64xf32> -> vector<16x64xf32>
    %38 = vector.extract_strided_slice %5 {offsets = [2, 0], sizes = [1, 64], strides = [1, 1]} : vector<9x64xf32> to vector<1x64xf32>
    %39 = vector.broadcast %38 : vector<1x64xf32> to vector<16x64xf32>
    %40 = arith.addf %37, %39 : vector<16x64xf32>
    %41 = vector.extract_strided_slice %7 {offsets = [1, 0, 0], sizes = [1, 64, 64], strides = [1, 1, 1]} : vector<3x64x64xbf16> to vector<1x64x64xbf16>
    %42 = vector.shape_cast %41 : vector<1x64x64xbf16> to vector<64x64xbf16>
    %cst_14 = arith.constant dense<0.000000e+00> : vector<16x64xf32>
    %43 = tpu.matmul %34, %42, %cst_14 {dimension_numbers = #tpu.dot_dimension_numbers<[1], [0], [0], [1], [0, 0, 1, 1], [], []>} : vector<16x64xbf16>, vector<64x64xbf16>, vector<16x64xf32> -> vector<16x64xf32>
    %44 = vector.extract_strided_slice %5 {offsets = [3, 0], sizes = [1, 64], strides = [1, 1]} : vector<9x64xf32> to vector<1x64xf32>
    %45 = vector.broadcast %44 : vector<1x64xf32> to vector<16x64xf32>
    %46 = arith.addf %43, %45 : vector<16x64xf32>
    %47 = vector.extract_strided_slice %7 {offsets = [2, 0, 0], sizes = [1, 64, 64], strides = [1, 1, 1]} : vector<3x64x64xbf16> to vector<1x64x64xbf16>
    %48 = vector.shape_cast %47 : vector<1x64x64xbf16> to vector<64x64xbf16>
    %cst_15 = arith.constant dense<0.000000e+00> : vector<16x64xf32>
    %49 = tpu.matmul %34, %48, %cst_15 {dimension_numbers = #tpu.dot_dimension_numbers<[1], [0], [0], [1], [0, 0, 1, 1], [], []>} : vector<16x64xbf16>, vector<64x64xbf16>, vector<16x64xf32> -> vector<16x64xf32>
    %50 = vector.extract_strided_slice %5 {offsets = [4, 0], sizes = [1, 64], strides = [1, 1]} : vector<9x64xf32> to vector<1x64xf32>
    %51 = vector.broadcast %50 : vector<1x64xf32> to vector<16x64xf32>
    %52 = arith.addf %49, %51 : vector<16x64xf32>
    %53 = vector.shape_cast %40 : vector<16x64xf32> to vector<2x8x64xf32>
    %54 = vector.extract_strided_slice %53 {offsets = [0, 0, 0], sizes = [2, 8, 16], strides = [1, 1, 1]} : vector<2x8x64xf32> to vector<2x8x16xf32>
    %55 = vector.extract_strided_slice %53 {offsets = [0, 0, 16], sizes = [2, 8, 16], strides = [1, 1, 1]} : vector<2x8x64xf32> to vector<2x8x16xf32>
    %56 = vector.extract_strided_slice %53 {offsets = [0, 0, 32], sizes = [2, 8, 16], strides = [1, 1, 1]} : vector<2x8x64xf32> to vector<2x8x16xf32>
    %57 = vector.extract_strided_slice %53 {offsets = [0, 0, 48], sizes = [2, 8, 16], strides = [1, 1, 1]} : vector<2x8x64xf32> to vector<2x8x16xf32>
    %58 = tpu.concatenate %54, %55, %56, %57 in 0 : vector<2x8x16xf32>, vector<2x8x16xf32>, vector<2x8x16xf32>, vector<2x8x16xf32> -> vector<8x8x16xf32>
    %59 = arith.truncf %58 : vector<8x8x16xf32> to vector<8x8x16xbf16>
    %60 = vector.shape_cast %46 : vector<16x64xf32> to vector<2x8x64xf32>
    %61 = vector.extract_strided_slice %60 {offsets = [0, 0, 0], sizes = [2, 8, 16], strides = [1, 1, 1]} : vector<2x8x64xf32> to vector<2x8x16xf32>
    %62 = vector.extract_strided_slice %60 {offsets = [0, 0, 16], sizes = [2, 8, 16], strides = [1, 1, 1]} : vector<2x8x64xf32> to vector<2x8x16xf32>
    %63 = vector.extract_strided_slice %60 {offsets = [0, 0, 32], sizes = [2, 8, 16], strides = [1, 1, 1]} : vector<2x8x64xf32> to vector<2x8x16xf32>
    %64 = vector.extract_strided_slice %60 {offsets = [0, 0, 48], sizes = [2, 8, 16], strides = [1, 1, 1]} : vector<2x8x64xf32> to vector<2x8x16xf32>
    %65 = tpu.concatenate %61, %62, %63, %64 in 0 : vector<2x8x16xf32>, vector<2x8x16xf32>, vector<2x8x16xf32>, vector<2x8x16xf32> -> vector<8x8x16xf32>
    %66 = arith.truncf %65 : vector<8x8x16xf32> to vector<8x8x16xbf16>
    %67 = vector.shape_cast %52 : vector<16x64xf32> to vector<2x8x64xf32>
    %68 = vector.extract_strided_slice %67 {offsets = [0, 0, 0], sizes = [2, 8, 16], strides = [1, 1, 1]} : vector<2x8x64xf32> to vector<2x8x16xf32>
    %69 = vector.extract_strided_slice %67 {offsets = [0, 0, 16], sizes = [2, 8, 16], strides = [1, 1, 1]} : vector<2x8x64xf32> to vector<2x8x16xf32>
    %70 = vector.extract_strided_slice %67 {offsets = [0, 0, 32], sizes = [2, 8, 16], strides = [1, 1, 1]} : vector<2x8x64xf32> to vector<2x8x16xf32>
    %71 = vector.extract_strided_slice %67 {offsets = [0, 0, 48], sizes = [2, 8, 16], strides = [1, 1, 1]} : vector<2x8x64xf32> to vector<2x8x16xf32>
    %72 = tpu.concatenate %68, %69, %70, %71 in 0 : vector<2x8x16xf32>, vector<2x8x16xf32>, vector<2x8x16xf32>, vector<2x8x16xf32> -> vector<8x8x16xf32>
    %73 = arith.truncf %72 : vector<8x8x16xf32> to vector<8x8x16xbf16>
    "tpu.trace_start"() <{level = 10 : i32, message = "bqd,bkd->bqk"}> : () -> ()
    %cst_16 = arith.constant dense<0.000000e+00> : vector<8x8x8xf32>
    %74 = tpu.matmul %59, %66, %cst_16 {dimension_numbers = #tpu.dot_dimension_numbers<[2], [2], [1], [1], [0, 0, 0, 1, 1, 1], [0], [0]>} : vector<8x8x16xbf16>, vector<8x8x16xbf16>, vector<8x8x8xf32> -> vector<8x8x8xf32>
    "tpu.trace_stop"() : () -> ()
    %cst_17 = arith.constant 2.500000e-01 : f32
    %75 = vector.broadcast %cst_17 : f32 to vector<8x8x8xf32>
    %76 = arith.mulf %74, %75 : vector<8x8x8xf32>
    %c0_18 = arith.constant 0 : index
    %c0_19 = arith.constant 0 : index
    %77 = vector.load %arg14[%c0_18, %c0_19] : memref<8x8xf32, #tpu.memory_space<vmem>>, vector<8x8xf32>
    %78 = vector.shape_cast %77 : vector<8x8xf32> to vector<1x8x8xf32>
    %79 = vector.broadcast %78 : vector<1x8x8xf32> to vector<8x8x8xf32>
    %80 = arith.addf %76, %79 : vector<8x8x8xf32>
    %cst_20 = arith.constant dense<0xFF800000> : vector<8x8xf32>
    %81 = vector.multi_reduction <maximumf>, %80, %cst_20 [2] : vector<8x8x8xf32> to vector<8x8xf32>
    %82 = vector.shape_cast %81 : vector<8x8xf32> to vector<8x8x1xf32>
    %83 = vector.broadcast %82 : vector<8x8x1xf32> to vector<8x8x8xf32>
    %84 = arith.subf %80, %83 : vector<8x8x8xf32>
    %85 = math.exp %84 : vector<8x8x8xf32>
    %cst_21 = arith.constant dense<0.000000e+00> : vector<8x8xf32>
    %86 = vector.multi_reduction <add>, %85, %cst_21 [2] : vector<8x8x8xf32> to vector<8x8xf32>
    %87 = vector.shape_cast %86 : vector<8x8xf32> to vector<8x8x1xf32>
    %88 = tpu.reciprocal %87 {approx = true} : vector<8x8x1xf32> -> vector<8x8x1xf32>
    %89 = vector.broadcast %88 : vector<8x8x1xf32> to vector<8x8x8xf32>
    %90 = arith.mulf %85, %89 : vector<8x8x8xf32>
    %91 = arith.truncf %90 : vector<8x8x8xf32> to vector<8x8x8xbf16>
    "tpu.trace_start"() <{level = 10 : i32, message = "bqk,bkd->bqd"}> : () -> ()
    %cst_22 = arith.constant dense<0.000000e+00> : vector<8x8x16xf32>
    %92 = tpu.matmul %91, %73, %cst_22 {dimension_numbers = #tpu.dot_dimension_numbers<[2], [1], [1], [2], [0, 0, 0, 1, 1, 2], [0], [0]>} : vector<8x8x8xbf16>, vector<8x8x16xbf16>, vector<8x8x16xf32> -> vector<8x8x16xf32>
    "tpu.trace_stop"() : () -> ()
    %93 = vector.extract_strided_slice %92 {offsets = [0, 0, 0], sizes = [2, 8, 16], strides = [1, 1, 1]} : vector<8x8x16xf32> to vector<2x8x16xf32>
    %94 = vector.extract_strided_slice %92 {offsets = [2, 0, 0], sizes = [2, 8, 16], strides = [1, 1, 1]} : vector<8x8x16xf32> to vector<2x8x16xf32>
    %95 = vector.extract_strided_slice %92 {offsets = [4, 0, 0], sizes = [2, 8, 16], strides = [1, 1, 1]} : vector<8x8x16xf32> to vector<2x8x16xf32>
    %96 = vector.extract_strided_slice %92 {offsets = [6, 0, 0], sizes = [2, 8, 16], strides = [1, 1, 1]} : vector<8x8x16xf32> to vector<2x8x16xf32>
    %97 = tpu.concatenate %93, %94, %95, %96 in 2 : vector<2x8x16xf32>, vector<2x8x16xf32>, vector<2x8x16xf32>, vector<2x8x16xf32> -> vector<2x8x64xf32>
    %98 = vector.shape_cast %97 : vector<2x8x64xf32> to vector<16x64xf32>
    %99 = arith.truncf %98 : vector<16x64xf32> to vector<16x64xbf16>
    %c0_23 = arith.constant 0 : index
    %c0_24 = arith.constant 0 : index
    %c0_25 = arith.constant 0 : index
    %100 = vector.load %arg5[%c0_23, %c0_24, %c0_25] : memref<1x64x64xbf16, #tpu.memory_space<vmem>>, vector<1x64x64xbf16>
    %101 = vector.shape_cast %100 : vector<1x64x64xbf16> to vector<64x64xbf16>
    %cst_26 = arith.constant dense<0.000000e+00> : vector<16x64xf32>
    %102 = tpu.matmul %99, %101, %cst_26 {dimension_numbers = #tpu.dot_dimension_numbers<[1], [0], [0], [1], [0, 0, 1, 1], [], []>} : vector<16x64xbf16>, vector<64x64xbf16>, vector<16x64xf32> -> vector<16x64xf32>
    %103 = vector.extract_strided_slice %5 {offsets = [5, 0], sizes = [1, 64], strides = [1, 1]} : vector<9x64xf32> to vector<1x64xf32>
    %104 = vector.broadcast %103 : vector<1x64xf32> to vector<16x64xf32>
    %105 = arith.addf %102, %104 : vector<16x64xf32>
    %106 = arith.addf %3, %105 : vector<16x64xf32>
    %107 = vector.extract_strided_slice %5 {offsets = [6, 0], sizes = [1, 64], strides = [1, 1]} : vector<9x64xf32> to vector<1x64xf32>
    %108 = vector.extract_strided_slice %5 {offsets = [7, 0], sizes = [1, 64], strides = [1, 1]} : vector<9x64xf32> to vector<1x64xf32>
    %cst_27 = arith.constant dense<0.000000e+00> : vector<16xf32>
    %109 = vector.multi_reduction <add>, %106, %cst_27 [1] : vector<16x64xf32> to vector<16xf32>
    %110 = vector.shape_cast %109 : vector<16xf32> to vector<16x1xf32>
    %cst_28 = arith.constant 6.400000e+01 : f32
    %111 = vector.broadcast %cst_28 : f32 to vector<16x1xf32>
    %112 = arith.divf %110, %111 : vector<16x1xf32>
    %113 = vector.broadcast %112 : vector<16x1xf32> to vector<16x64xf32>
    %114 = arith.subf %106, %113 : vector<16x64xf32>
    %115 = vector.broadcast %112 : vector<16x1xf32> to vector<16x64xf32>
    %116 = arith.subf %106, %115 : vector<16x64xf32>
    %117 = arith.mulf %114, %116 : vector<16x64xf32>
    %cst_29 = arith.constant dense<0.000000e+00> : vector<16xf32>
    %118 = vector.multi_reduction <add>, %117, %cst_29 [1] : vector<16x64xf32> to vector<16xf32>
    %119 = vector.shape_cast %118 : vector<16xf32> to vector<16x1xf32>
    %cst_30 = arith.constant 6.400000e+01 : f32
    %120 = vector.broadcast %cst_30 : f32 to vector<16x1xf32>
    %121 = arith.divf %119, %120 : vector<16x1xf32>
    %122 = vector.broadcast %112 : vector<16x1xf32> to vector<16x64xf32>
    %123 = arith.subf %106, %122 : vector<16x64xf32>
    %cst_31 = arith.constant 9.99999974E-6 : f32
    %124 = vector.broadcast %cst_31 : f32 to vector<16x1xf32>
    %125 = arith.addf %121, %124 : vector<16x1xf32>
    %126 = math.rsqrt %125 : vector<16x1xf32>
    %127 = vector.broadcast %126 : vector<16x1xf32> to vector<16x64xf32>
    %128 = arith.mulf %123, %127 : vector<16x64xf32>
    %129 = vector.broadcast %107 : vector<1x64xf32> to vector<16x64xf32>
    %130 = arith.mulf %128, %129 : vector<16x64xf32>
    %131 = vector.broadcast %108 : vector<1x64xf32> to vector<16x64xf32>
    %132 = arith.addf %130, %131 : vector<16x64xf32>
    %133 = arith.truncf %132 : vector<16x64xf32> to vector<16x64xbf16>
    %c0_32 = arith.constant 0 : index
    %c0_33 = arith.constant 0 : index
    %c0_34 = arith.constant 0 : index
    %134 = vector.load %arg6[%c0_32, %c0_33, %c0_34] : memref<1x64x256xbf16, #tpu.memory_space<vmem>>, vector<1x64x256xbf16>
    %135 = vector.shape_cast %134 : vector<1x64x256xbf16> to vector<64x256xbf16>
    %cst_35 = arith.constant dense<0.000000e+00> : vector<16x256xf32>
    %136 = tpu.matmul %133, %135, %cst_35 {dimension_numbers = #tpu.dot_dimension_numbers<[1], [0], [0], [1], [0, 0, 1, 1], [], []>} : vector<16x64xbf16>, vector<64x256xbf16>, vector<16x256xf32> -> vector<16x256xf32>
    %c0_36 = arith.constant 0 : index
    %c0_37 = arith.constant 0 : index
    %c0_38 = arith.constant 0 : index
    %137 = vector.load %arg8[%c0_36, %c0_37, %c0_38] : memref<1x1x256xf32, #tpu.memory_space<vmem>>, vector<1x1x256xf32>
    %138 = vector.shape_cast %137 : vector<1x1x256xf32> to vector<1x256xf32>
    %139 = vector.broadcast %138 : vector<1x256xf32> to vector<16x256xf32>
    %140 = arith.addf %136, %139 : vector<16x256xf32>
    %141 = arith.mulf %140, %140 : vector<16x256xf32>
    %142 = arith.mulf %140, %141 : vector<16x256xf32>
    %cst_39 = arith.constant 4.471500e-02 : f32
    %143 = vector.broadcast %cst_39 : f32 to vector<16x256xf32>
    %144 = arith.mulf %143, %142 : vector<16x256xf32>
    %145 = arith.addf %140, %144 : vector<16x256xf32>
    %cst_40 = arith.constant 0.797884583 : f32
    %146 = vector.broadcast %cst_40 : f32 to vector<16x256xf32>
    %147 = arith.mulf %146, %145 : vector<16x256xf32>
    %148 = math.tanh %147 : vector<16x256xf32>
    %cst_41 = arith.constant 1.000000e+00 : f32
    %149 = vector.broadcast %cst_41 : f32 to vector<16x256xf32>
    %150 = arith.addf %149, %148 : vector<16x256xf32>
    %cst_42 = arith.constant 5.000000e-01 : f32
    %151 = vector.broadcast %cst_42 : f32 to vector<16x256xf32>
    %152 = arith.mulf %151, %150 : vector<16x256xf32>
    %153 = arith.mulf %140, %152 : vector<16x256xf32>
    %154 = arith.truncf %153 : vector<16x256xf32> to vector<16x256xbf16>
    %c0_43 = arith.constant 0 : index
    %c0_44 = arith.constant 0 : index
    %c0_45 = arith.constant 0 : index
    %155 = vector.load %arg7[%c0_43, %c0_44, %c0_45] : memref<1x256x64xbf16, #tpu.memory_space<vmem>>, vector<1x256x64xbf16>
    %156 = vector.shape_cast %155 : vector<1x256x64xbf16> to vector<256x64xbf16>
    %cst_46 = arith.constant dense<0.000000e+00> : vector<16x64xf32>
    %157 = tpu.matmul %154, %156, %cst_46 {dimension_numbers = #tpu.dot_dimension_numbers<[1], [0], [0], [1], [0, 0, 1, 1], [], []>} : vector<16x256xbf16>, vector<256x64xbf16>, vector<16x64xf32> -> vector<16x64xf32>
    %158 = vector.extract_strided_slice %5 {offsets = [8, 0], sizes = [1, 64], strides = [1, 1]} : vector<9x64xf32> to vector<1x64xf32>
    %159 = vector.broadcast %158 : vector<1x64xf32> to vector<16x64xf32>
    %160 = arith.addf %157, %159 : vector<16x64xf32>
    %161 = arith.addf %106, %160 : vector<16x64xf32>
    %c0_47 = arith.constant 0 : index
    %c0_48 = arith.constant 0 : index
    %162 = vector.load %arg13[%c0_47, %c0_48] : memref<16x64xf32, #tpu.memory_space<vmem>>, vector<16x64xf32>
    tpu.vector_store %arg13[%c0_47, %c0_48], %161 {strides = array<i32>} : memref<16x64xf32, #tpu.memory_space<vmem>>, vector<16x64xf32>,
    %c1_i32 = arith.constant 1 : i32
    %163 = arith.cmpi eq, %arg1, %c1_i32 : i32
    %164 = arith.extui %163 : i1 to i32
    %c0_i32_49 = arith.constant 0 : i32
    %165 = arith.cmpi ne, %164, %c0_i32_49 : i32
    scf.if %165 {
      %c0_50 = arith.constant 0 : index
      %c0_51 = arith.constant 0 : index
      %166 = vector.load %arg10[%c0_50, %c0_51] : memref<3x64xf32, #tpu.memory_space<vmem>>, vector<3x64xf32>
      %167 = vector.extract_strided_slice %166 {offsets = [0, 0], sizes = [1, 64], strides = [1, 1]} : vector<3x64xf32> to vector<1x64xf32>
      %168 = vector.extract_strided_slice %166 {offsets = [1, 0], sizes = [1, 64], strides = [1, 1]} : vector<3x64xf32> to vector<1x64xf32>
      %cst_52 = arith.constant dense<0.000000e+00> : vector<16xf32>
      %169 = vector.multi_reduction <add>, %161, %cst_52 [1] : vector<16x64xf32> to vector<16xf32>
      %170 = vector.shape_cast %169 : vector<16xf32> to vector<16x1xf32>
      %cst_53 = arith.constant 6.400000e+01 : f32
      %171 = vector.broadcast %cst_53 : f32 to vector<16x1xf32>
      %172 = arith.divf %170, %171 : vector<16x1xf32>
      %173 = vector.broadcast %172 : vector<16x1xf32> to vector<16x64xf32>
      %174 = arith.subf %161, %173 : vector<16x64xf32>
      %175 = vector.broadcast %172 : vector<16x1xf32> to vector<16x64xf32>
      %176 = arith.subf %161, %175 : vector<16x64xf32>
      %177 = arith.mulf %174, %176 : vector<16x64xf32>
      %cst_54 = arith.constant dense<0.000000e+00> : vector<16xf32>
      %178 = vector.multi_reduction <add>, %177, %cst_54 [1] : vector<16x64xf32> to vector<16xf32>
      %179 = vector.shape_cast %178 : vector<16xf32> to vector<16x1xf32>
      %cst_55 = arith.constant 6.400000e+01 : f32
      %180 = vector.broadcast %cst_55 : f32 to vector<16x1xf32>
      %181 = arith.divf %179, %180 : vector<16x1xf32>
      %182 = vector.broadcast %172 : vector<16x1xf32> to vector<16x64xf32>
      %183 = arith.subf %161, %182 : vector<16x64xf32>
      %cst_56 = arith.constant 9.99999974E-6 : f32
      %184 = vector.broadcast %cst_56 : f32 to vector<16x1xf32>
      %185 = arith.addf %181, %184 : vector<16x1xf32>
      %186 = math.rsqrt %185 : vector<16x1xf32>
      %187 = vector.broadcast %186 : vector<16x1xf32> to vector<16x64xf32>
      %188 = arith.mulf %183, %187 : vector<16x64xf32>
      %189 = vector.broadcast %167 : vector<1x64xf32> to vector<16x64xf32>
      %190 = arith.mulf %188, %189 : vector<16x64xf32>
      %191 = vector.broadcast %168 : vector<1x64xf32> to vector<16x64xf32>
      %192 = arith.addf %190, %191 : vector<16x64xf32>
      %193 = arith.truncf %192 : vector<16x64xf32> to vector<16x64xbf16>
      %c0_57 = arith.constant 0 : index
      %c0_58 = arith.constant 0 : index
      %194 = vector.load %arg11[%c0_57, %c0_58] : memref<64x64xbf16, #tpu.memory_space<vmem>>, vector<64x64xbf16>
      %cst_59 = arith.constant dense<0.000000e+00> : vector<16x64xf32>
      %195 = tpu.matmul %193, %194, %cst_59 {dimension_numbers = #tpu.dot_dimension_numbers<[1], [0], [0], [1], [0, 0, 1, 1], [], []>} : vector<16x64xbf16>, vector<64x64xbf16>, vector<16x64xf32> -> vector<16x64xf32>
      %196 = vector.extract_strided_slice %166 {offsets = [2, 0], sizes = [1, 64], strides = [1, 1]} : vector<3x64xf32> to vector<1x64xf32>
      %197 = vector.broadcast %196 : vector<1x64xf32> to vector<16x64xf32>
      %198 = arith.addf %195, %197 : vector<16x64xf32>
      %199 = vector.shape_cast %198 : vector<16x64xf32> to vector<2x8x64xf32>
      %c0_60 = arith.constant 0 : index
      %c0_61 = arith.constant 0 : index
      %c0_62 = arith.constant 0 : index
      %200 = vector.load %arg12[%c0_60, %c0_61, %c0_62] : memref<2x8x64xf32, #tpu.memory_space<vmem>>, vector<2x8x64xf32>
      tpu.vector_store %arg12[%c0_60, %c0_61, %c0_62], %199 {strides = array<i32>} : memref<2x8x64xf32, #tpu.memory_space<vmem>>, vector<2x8x64xf32>,
    } else {
    }
    return
  }
  func.func @transform_0(%arg0: i32, %arg1: i32) -> (i32, i32, i32) {
    %c0_i32 = arith.constant 0 : i32
    %c0_i32_0 = arith.constant 0 : i32
    %c0_i32_1 = arith.constant 0 : i32
    return %arg0, %c0_i32, %c0_i32_0 : i32, i32, i32
  }
  func.func @transform_1(%arg0: i32, %arg1: i32) -> (i32, i32) {
    %c0_i32 = arith.constant 0 : i32
    %c0_i32_0 = arith.constant 0 : i32
    %c0_i32_1 = arith.constant 0 : i32
    return %c0_i32, %c0_i32_0 : i32, i32
  }
  func.func @transform_2(%arg0: i32, %arg1: i32) -> (i32, i32, i32, i32) {
    %c0_i32 = arith.constant 0 : i32
    %c0_i32_0 = arith.constant 0 : i32
    %c0_i32_1 = arith.constant 0 : i32
    %c0_i32_2 = arith.constant 0 : i32
    return %arg1, %c0_i32, %c0_i32_0, %c0_i32_1 : i32, i32, i32, i32
  }
  func.func @transform_3(%arg0: i32, %arg1: i32) -> (i32, i32, i32) {
    %c0_i32 = arith.constant 0 : i32
    %c0_i32_0 = arith.constant 0 : i32
    %c0_i32_1 = arith.constant 0 : i32
    return %arg1, %c0_i32, %c0_i32_0 : i32, i32, i32
  }
  func.func @transform_4(%arg0: i32, %arg1: i32) -> (i32, i32, i32) {
    %c0_i32 = arith.constant 0 : i32
    %c0_i32_0 = arith.constant 0 : i32
    %c0_i32_1 = arith.constant 0 : i32
    return %arg1, %c0_i32, %c0_i32_0 : i32, i32, i32
  }
  func.func @transform_5(%arg0: i32, %arg1: i32) -> (i32, i32, i32) {
    %c0_i32 = arith.constant 0 : i32
    %c0_i32_0 = arith.constant 0 : i32
    %c0_i32_1 = arith.constant 0 : i32
    return %arg1, %c0_i32, %c0_i32_0 : i32, i32, i32
  }
  func.func @transform_6(%arg0: i32, %arg1: i32) -> (i32, i32, i32) {
    %c0_i32 = arith.constant 0 : i32
    %c0_i32_0 = arith.constant 0 : i32
    %c0_i32_1 = arith.constant 0 : i32
    return %arg1, %c0_i32, %c0_i32_0 : i32, i32, i32
  }
  func.func @transform_7(%arg0: i32, %arg1: i32) -> (i32, i32, i32) {
    %c0_i32 = arith.constant 0 : i32
    %c0_i32_0 = arith.constant 0 : i32
    %c0_i32_1 = arith.constant 0 : i32
    return %arg1, %c0_i32, %c0_i32_0 : i32, i32, i32
  }
  func.func @transform_8(%arg0: i32, %arg1: i32) -> (i32, i32) {
    %c0_i32 = arith.constant 0 : i32
    %c0_i32_0 = arith.constant 0 : i32
    %c0_i32_1 = arith.constant 0 : i32
    return %c0_i32, %c0_i32_0 : i32, i32
  }
  func.func @transform_9(%arg0: i32, %arg1: i32) -> (i32, i32) {
    %c0_i32 = arith.constant 0 : i32
    %c0_i32_0 = arith.constant 0 : i32
    %c0_i32_1 = arith.constant 0 : i32
    return %c0_i32, %c0_i32_0 : i32, i32
  }
  func.func @transform_10(%arg0: i32, %arg1: i32) -> (i32, i32, i32) {
    %c0_i32 = arith.constant 0 : i32
    %c0_i32_0 = arith.constant 0 : i32
    %c0_i32_1 = arith.constant 0 : i32
    return %arg0, %c0_i32, %c0_i32_0 : i32, i32, i32
  }
}

</mosaic_0001>

<bundles_post_ra>
// kernel: transformer_forward.1
= control target key start
LH: loop header
LB: loop body
LE: loop exit
PB: predicated region body
PF: predicated region fallthrough
CT: control target
= control target key end

     0   :  { %s3083_s13 = smov 0   ;;  %s3085_s14 = smov 0   ;;  %s3454_s0 = inlined_call_operand.vmem [shape: f32[2,8,64], index: 0, kind: input, shape index: {}]   ;;  %s3455_s1 = inlined_call_operand.vmem [shape: f32[8,64], index: 1, kind: input, shape index: {}]   ;;  %s3456_s2 = inlined_call_operand.vmem [shape: bf16[2,3,64,64], index: 2, kind: input, shape index: {}]   ;;  %s3457_s3 = inlined_call_operand.vmem [shape: bf16[2,64,64], index: 3, kind: input, shape index: {}]   ;;  %s3458_s4 = inlined_call_operand.vmem [shape: bf16[2,64,256], index: 4, kind: input, shape index: {}]   ;;  %s3459_s5 = inlined_call_operand.vmem [shape: bf16[2,256,64], index: 5, kind: input, shape index: {}]   ;;  %s3460_s6 = inlined_call_operand.vmem [shape: f32[2,1,256], index: 6, kind: input, shape index: {}]   ;;  %s3461_s7 = inlined_call_operand.vmem [shape: f32[2,9,64], index: 7, kind: input, shape index: {}]   ;;  %s3462_s8 = inlined_call_operand.vmem [shape: f32[3,64], index: 8, kind: input, shape index: {}]   ;;  %s3463_s9 = inlined_call_operand.vmem [shape: bf16[64,64], index: 9, kind: input, shape index: {}]   ;;  %s3464_s10 = inlined_call_operand.vmem [shape: f32[2,8,64], index: 10, kind: output, shape index: {}]  }
   0x1   :  { %3466 = sst [smem:[#allocation6_spill]] %s3456_s2  ;;  %s3087_s15 = smov 0  }
   0x2 LB: > { %3467 = sst [smem:[#allocation4_spill]] %s3010_s14  ;;  %s29_s16 = sadd.s32 1, %s3010_s14  ;;  %s3014_s15 = sphi %s3087_s15, %s20_s15   ;;  %s3010_s14 = sphi %s3085_s14, %s3471_s14   ;;  %s3006_s13 = sphi %s3083_s13, %s3470_s13  }
   0x3   : > { %p2470_p0 = scmp.ge.s32.totalorder %s3014_s15, 1  ;;  %p30_p1 = scmp.ge.s32.totalorder %s29_s16, 2 }
   0x4   : > { %p384_p2 = scmp.lt.s32.totalorder %s3014_s15, 3 }
   0x5   : > { %s3473_s16 = smov (%p30_p1, %s29_s16), 0 }
   0x6   : > { %3468 = sst [smem:[#allocation5_spill]] %s3473_s16  ;;  %p385_p3 = pnand %p2470_p0, %p384_p2 }
   0x7   : > { %p457_p4 = scmp.lt.s32.totalorder (!%p385_p3), %s3006_s13, 1  ;;  %s3469_s2 = sld [smem:[#allocation6_spill]] (!%p385_p3) }
   0x8   : > { %388 = sbr.rel (%p385_p3) target bundleno = 3048 (0xbe8), region = 60  ;;  %p2481_p5 = scmp.ne.s32.totalorder (!%p385_p3), %s3006_s13, 0 }
   0xd   : > { %s458_s17 = scalar_select %p457_p4, %s3006_s13, 1 }
   0xf   : > { %s2793_s18 = smul.u32 96, %s458_s17  ;;  %s2554_s19 = sshll.u32 %s458_s17, 5 }
  0x10   : > { %s3108_s22 = scalar_lea.vmem %s3457_s3, %s2554_s19  ;;  %s2555_s23 = sshll.u32 %s458_s17, 6 }
  0x11   : > { %s3113_s26 = scalar_lea.vmem %s3469_s2, %s2793_s18  ;;  %s3118_s29 = scalar_lea.vmem %s3458_s4, %s2555_s23 }
  0x12   : > { %s2556_s30 = sshll.u32 %s458_s17, 7  ;;  %s2478_s11 = sshll.u32 %s458_s17, 1 }
  0x13   : > { %s3123_s14 = scalar_lea.vmem %s3459_s5, %s2556_s30  ;;  %s3128_s21 = scalar_lea.vmem %s3460_s6, %s2478_s11 }
  0x14   : > { %s2557_s24 = sshll.u32 %s458_s17, 4  ;;  %496 = sbr.rel (%p2481_p5) target bundleno = 32 (0x20), region = 64 }
  0x15   : > { %s3133_s2 = scalar_lea.vmem %s3461_s7, %s2557_s24 }
  0x19   : > { %v497_v0 = vld [vmem:[%s3454_s0] sm:$0xff]  ;;  %vm502_vm0 = vcmask 523264   ;;  %v498_v2 = vld [vmem:[%s3454_s0 + $0x8] sm:$0xff]  ;;  %v505_v3 = vlaneseq  ;;  %vm511_vm1 = vcmask 64512   ;;  %v3016_v8 = vmov -1e+30  }
  0x1a   : > { %v499_v1 = vld [vmem:[%s3455_s1] sm:$0xff] }
  0x1b   : > { %v500_v4 = vadd.f32 %v499_v1, %v497_v0  ;;  %v501_v5 = vadd.f32 %v499_v1, %v498_v2  ;;  %v506_v6 = vshrl.u32 %v505_v3, 7  ;;  %v508_v7 = vand.u32 127, %v505_v3 }
  0x1d   : > { %503 = vst.msk [vmem:[#allocation2] sm:$0xff] %vm502_vm0, %v500_v4  ;;  %504 = vst.msk [vmem:[#allocation2 + $0x8] sm:$0xff] %vm502_vm0, %v501_v5  ;;  %vm509_vm2 = vcmp.le.s32.totalorder %v508_v7, %v506_v6 }
  0x1e   : > { %v510_v9 = vsel %vm509_vm2, 0.0, %v3016_v8 }
  0x1f   : > { %512 = vst.msk [vmem:[#allocation3] sm:$0xff] %vm511_vm1, %v510_v9 }
  0x20 PF: > { %vm541_vm3 = vcmask 523264   ;;  %v2890_v24 = vld [vmem:[%s3113_s26 + $0x18] sm:$0xff]   ;;  %v3017_v26 = vmov 0.0   ;;  %v2892_v27 = vld [vmem:[%s3113_s26 + $0x10] sm:$0xff]   ;;  %vm3018_vm4 = vmmov 0   ;;  %v2894_v29 = vld [vmem:[%s3113_s26 + $0x8] sm:$0xff]   ;;  %v569_v39 = vlaneseq }
  0x21   : > { %v2891_v25 = vld [vmem:[%s3113_s26 + $0x58] sm:$0xff]   ;;  %2637 = vmatprep.subr.bf16.mxu1 %v3017_v26  ;;  %2661 = vmatprep.subr.bf16.mxu0 %v3017_v26  ;;  %v2893_v28 = vld [vmem:[%s3113_s26 + $0x50] sm:$0xff]   ;;  %v2895_v30 = vld [vmem:[%s3113_s26 + $0x48] sm:$0xff]   ;;  %s3019_s17 = smov 112   ;;  %vm876_vm5 = vcmask 130048   ;;  %s3021_s12 = smov 80  }
  0x22   : > { %2638 = vmatpush3.bf16.msra.mxu1 %v2890_v24  ;;  %2662 = vmatpush3.bf16.msra.mxu0 %v2891_v25  ;;  %v2896_v31 = vld [vmem:[%s3113_s26] sm:$0xff]   ;;  %v3171_v40 = vshrl.u32 %v569_v39, 7  ;;  %v2898_v54 = vld [vmem:[%s3113_s26 + $0x38] sm:$0xff]   ;;  %v2899_v56 = vld [vmem:[%s3113_s26 + $0x30] sm:$0xff]   ;;  %vm1362_vm6 = vcmask 1043456   ;;  %vm1262_vm7 = vcmask 64512  }
  0x23   : > { %2639 = vmatprep.subr.bf16.mxu1 %v3017_v26  ;;  %2663 = vmatprep.subr.bf16.mxu0 %v3017_v26  ;;  %v2897_v32 = vld [vmem:[%s3113_s26 + $0x40] sm:$0xff]   ;;  %v2900_v57 = vld [vmem:[%s3113_s26 + $0x28] sm:$0xff]   ;;  %s3022_s19 = smov 16   ;;  %s3023_s20 = smov 32   ;;  %vm1754_vm8 = vcmask 261120   ;;  %vm1757_vm9 = vcmask 392192  }
  0x24   : > { %v513_v10 = vld [vmem:[#allocation2] sm:$0xff]  ;;  %v514_v11 = vld [vmem:[#allocation2 + $0x8] sm:$0xff]  ;;  %2645 = vmatprep.mubr.msk.bf16.mxu1 %vm3018_vm4, %v3017_v26  ;;  %2669 = vmatprep.mubr.msk.bf16.mxu0 %vm3018_vm4, %v3017_v26  ;;  %v3174_v41 = vsub.s32 0, %v3171_v40  ;;  %v3182_v46 = vsub.s32 1, %v3171_v40  ;;  %v584_v59 = vsub.s32 2, %v3171_v40  ;;  %v725_v60 = vsub.s32 4, %v3171_v40 }
  0x25   : > { %v542_v12 = vsel %vm541_vm3, %v513_v10, 0.0  ;;  %v545_v13 = vsel %vm541_vm3, %v514_v11, 0.0  ;;  %v3177_v42 = vld [vmem:[%s3133_s2] sm:$0xff]  ;;  %s3024_s24 = smov 48   ;;  %p2544_p6 = scmp.ne.s32.totalorder %s3006_s13, 1 }
  0x26   : > { %543 = vadd.xlane.f32.xlu0 %v542_v12  ;;  %2640 = vmatpush3.bf16.msra.mxu1 %v2892_v27  ;;  %v572_v45 = vrot.slane %v3177_v42, %v3174_v41  ;;  %v578_v50 = vrot.slane %v3177_v42, %v3182_v46  ;;  %v2901_v58 = vld [vmem:[%s3113_s26 + $0x20] sm:$0xff]   ;;  %v585_v63 = vrot.slane %v3177_v42, %v584_v59  ;;  %s3020_s26 = smov 96  }
  0x27   : > { %2664 = vmatpush3.bf16.msra.mxu0 %v2893_v28  ;;  %2641 = vmatprep.subr.bf16.mxu1 %v3017_v26  ;;  %v726_v0 = vrot.slane %v3177_v42, %v725_v60 }
  0x28   : > { %2665 = vmatprep.subr.bf16.mxu0 %v3017_v26 }
  0x2a   : > { %546 = vadd.xlane.f32.xlu0 %v545_v13  ;;  %2642 = vmatpush3.bf16.msra.mxu1 %v2894_v29  ;;  %v656_v13 = vsub.s32 3, %v3171_v40 }
  0x2b   : > { %2666 = vmatpush3.bf16.msra.mxu0 %v2895_v30  ;;  %2643 = vmatprep.subr.bf16.mxu1 %v3017_v26 }
  0x2c   : > { %2667 = vmatprep.subr.bf16.mxu0 %v3017_v26 }
  0x2e   : > { %2644 = vmatpush3.bf16.msra.mxu1 %v2896_v31 }
  0x2f   : > { %2668 = vmatpush3.bf16.msra.mxu0 %v2897_v32  ;;  %2649 = vmatprep.subr.bf16.mxu1 %v3017_v26 }
  0x30   : > { %2685 = vmatprep.subr.bf16.mxu0 %v3017_v26 }
  0xaf   : > { %v544_v14 = vpop.xlane.xlu0 %543 }
  0xb0   : > { %v549_v15 = vmul.f32 0.015625, %v544_v14  ;;  %v657_v14 = vrot.slane %v3177_v42, %v656_v13 }
  0xb2   : > { %v551_v16 = vsub.f32 %v513_v10, %v549_v15 }
  0xb3   : > { %v547_v17 = vpop.xlane.xlu0 %546 }
  0xb4   : > { %v550_v18 = vmul.f32 0.015625, %v547_v17  ;;  %v553_v19 = vmul.f32 %v551_v16, %v551_v16 }
  0xb6   : > { %v552_v20 = vsub.f32 %v514_v11, %v550_v18  ;;  %v555_v21 = vsel %vm541_vm3, %v553_v19, 0.0 }
  0xb7   : > { %556 = vadd.xlane.f32.xlu1 %v555_v21 }
  0xb8   : > { %v554_v22 = vmul.f32 %v552_v20, %v552_v20 }
  0xba   : > { %v558_v23 = vsel %vm541_vm3, %v554_v22, 0.0 }
  0xbb   : > { %559 = vadd.xlane.f32.xlu1 %v558_v23 }
 0x140   : > { %v557_v33 = vpop.xlane.xlu1 %556 }
 0x141   : > { %v561_v34 = vmul.f32 0.015625, %v557_v33 }
 0x143   : > { %v563_v35 = vadd.f32 1e-05, %v561_v34 }
 0x144   : > { %v560_v36 = vpop.xlane.xlu1 %559 }
 0x145   : > { %2934 = vrsqrt.f32 %v563_v35  ;;  %v562_v37 = vmul.f32 0.015625, %v560_v36 }
 0x147   : > { %v564_v38 = vadd.f32 1e-05, %v562_v37 }
 0x149   : > { %2936 = vrsqrt.f32 %v564_v38 }
 0x152   : > { %v2935_v43 = vpop.eup %2934 }
 0x153   : > { %v567_v44 = vmul.f32 %v2935_v43, %v551_v16 }
 0x155   : > { %v573_v49 = vmul.f32 %v572_v45, %v567_v44 }
 0x156   : > { %v2937_v47 = vpop.eup %2936 }
 0x157   : > { %v568_v48 = vmul.f32 %v2937_v47, %v552_v20  ;;  %v579_v52 = vadd.f32 %v578_v50, %v573_v49 }
 0x159   : > { %v574_v51 = vmul.f32 %v572_v45, %v568_v48 }
 0x15b   : > { %v580_v53 = vadd.f32 %v578_v50, %v574_v51 }
 0x15d   : > { %v581_v55 = vpack.c.bf16 %v580_v53, %v579_v52 }
 0x15f   : > { %2646 = vmatmul.mubr.msk.bf16.vlgmr.msra.gmra.mxu1 %vm541_vm3, %v581_v55  ;;  %2670 = vmatmul.mubr.msk.bf16.vlgmr.msra.gmra.mxu0 %vm541_vm3, %v581_v55 }
 0x160   : > { %2650 = vmatpush3.bf16.msra.mxu1 %v2898_v54  ;;  %2657 = vmatprep.mubr.msk.bf16.mxu1 %vm3018_vm4, %v3017_v26 }
 0x161   : > { %2651 = vmatprep.subr.bf16.mxu1 %v3017_v26  ;;  %2687 = vmatprep.mubr.msk.bf16.mxu0 %vm3018_vm4, %v3017_v26 }
 0x164   : > { %2652 = vmatpush3.bf16.msra.mxu1 %v2899_v56 }
 0x165   : > { %2653 = vmatprep.subr.bf16.mxu1 %v3017_v26 }
 0x168   : > { %2654 = vmatpush3.bf16.msra.mxu1 %v2900_v57 }
 0x169   : > { %2655 = vmatprep.subr.bf16.mxu1 %v3017_v26 }
 0x16c   : > { %2656 = vmatpush3.bf16.msra.mxu1 %v2901_v58 }
 0x16d   : > { %2673 = vmatprep.subr.bf16.mxu1 %v3017_v26 }
 0x16f   : > { %2658 = vmatmul.mubr.msk.bf16.vlgmr.msra.gmra.mxu1 %vm541_vm3, %v581_v55 }
 0x170   : > { %2675 = vmatprep.mubr.msk.bf16.mxu1 %vm3018_vm4, %v3017_v26 }
 0x21f   : > { %v647_v61 = vpop.f32.mrf.mxu1  ;;  %v785_v62 = vpop.f32.mrf.mxu0 }
 0x220   : > { %v648_v5 = vadd.f32 %v647_v61, %v585_v63  ;;  %v3211_v8 = vadd.f32 %v785_v62, %v726_v0 }
 0x221   : > { %v2647_v1 = vpop.f32.mrf.mxu1  ;;  %v2671_v2 = vpop.f32.mrf.mxu0 }
 0x222   : > { %v812_v25 = vpack.c.bf16 %v648_v5, %v648_v5 }
 0x223   : > { %v650_v3 = vpop.f32.mrf.mxu1  ;;  %v788_v4 = vpop.f32.mrf.mxu0 }
 0x224   : > { %v651_v6 = vadd.f32 %v650_v3, %v585_v63  ;;  %v3209_v7 = vadd.f32 %v788_v4, %v726_v0  ;;  %v868_v4 = vpack.c.bf16 %v3211_v8, %v3211_v8 }
 0x225   : > { %v2648_v9 = vpop.f32.mrf.mxu1  ;;  %v2672_v10 = vpop.f32.mrf.mxu0 }
 0x226   : > { %v2835_v11 = vpack.i.bf16 %v651_v6, %v648_v5  ;;  %v3215_v12 = vpack.i.bf16 %v3209_v7, %v3211_v8  ;;  %v813_v28 = vpack.c.bf16 %v651_v6, %v651_v6  ;;  %v869_v5 = vpack.c.bf16 %v3209_v7, %v3209_v7  ;;  %v1253_v8 = vld [vmem:[#allocation3] sm:$0xff] }
 0x227   : > { %v1364_v10 = vsel %vm1362_vm6, %v868_v4, 0 }
 0x228   : > { %2836 = vrot.lane.b32.xlu1 %v2835_v11, %s3019_s17 }
 0x22f   : > { %v716_v15 = vpop.f32.mrf.mxu1 }
 0x230   : > { %v717_v16 = vadd.f32 %v716_v15, %v657_v14 }
 0x231   : > { %v2659_v17 = vpop.f32.mrf.mxu1 }
 0x232   : > { %v840_v18 = vpack.c.bf16 %v717_v16, %v717_v16 }
 0x233   : > { %v719_v19 = vpop.f32.mrf.mxu1 }
 0x234   : > { %v720_v20 = vadd.f32 %v719_v19, %v657_v14  ;;  %v881_v21 = vsel %vm876_vm5, %v840_v18, 0 }
 0x235   : > { %v2660_v22 = vpop.f32.mrf.mxu1  ;;  %2674 = vmatpush3.bf16.xpose.msra.mxu1 %v881_v21 }
 0x236   : > { %v2840_v23 = vpack.i.bf16 %v720_v20, %v717_v16  ;;  %2679 = vmatprep.subr.bf16.mxu1 %v3017_v26  ;;  %v841_v24 = vpack.c.bf16 %v720_v20, %v720_v20 }
 0x238   : > { %2841 = vrot.lane.b32.xlu1 %v2840_v23, %s3020_s26  ;;  %2831 = vrot.lane.b32.xlu0 %v2840_v23, %s3019_s17  ;;  %v927_v27 = vsel %vm876_vm5, %v841_v24, 0 }
 0x23c   : > { %2676 = vmatmul.mubr.msk.bf16.vlgmr.msra.gmra.mxu1 %vm876_vm5, %v812_v25  ;;  %2846 = vrot.lane.b32.xlu1 %v2835_v11, %s3020_s26 }
 0x23d   : > { %2851 = vrot.lane.b32.xlu0 %v2840_v23, %s3021_s12  ;;  %2680 = vmatpush3.bf16.xpose.msra.mxu1 %v927_v27 }
 0x23e   : > { %2681 = vmatprep.mubr.msk.bf16.mxu1 %vm3018_vm4, %v3017_v26  ;;  %2691 = vmatprep.subr.bf16.mxu1 %v3017_v26 }
 0x240   : > { %2856 = vrot.lane.b32.xlu1 %v2835_v11, %s3021_s12  ;;  %v1410_v11 = vsel %vm1362_vm6, %v869_v5, 0 }
 0x244   : > { %2682 = vmatmul.mubr.msk.bf16.vlgmr.msra.gmra.mxu1 %vm876_vm5, %v813_v28 }
 0x245   : > { %2693 = vmatprep.mubr.msk.bf16.mxu1 %vm3018_vm4, %v3017_v26 }
 0x29a   : > { %v2837_v29 = vpop.permute.xlu1 %2836 }
 0x29b   : > { %v2839_v43 = vunpack.i.h.bf16 %v2837_v29  ;;  %v2838_v44 = vunpack.i.l.bf16 %v2837_v29 }
 0x29d   : > { %v815_v49 = vpack.c.bf16 %v2839_v43, %v2839_v43  ;;  %v814_v50 = vpack.c.bf16 %v2838_v44, %v2838_v44 }
 0x2aa   : > { %v2832_v30 = vpop.permute.xlu0 %2831  ;;  %v2842_v33 = vpop.permute.xlu1 %2841 }
 0x2ab   : > { %v2834_v31 = vunpack.i.h.bf16 %v2832_v30  ;;  %v2833_v32 = vunpack.i.l.bf16 %v2832_v30  ;;  %v2844_v36 = vunpack.i.h.bf16 %v2842_v33  ;;  %v2843_v37 = vunpack.i.l.bf16 %v2842_v33 }
 0x2ad   : > { %v843_v34 = vpack.c.bf16 %v2834_v31, %v2834_v31  ;;  %v842_v35 = vpack.c.bf16 %v2833_v32, %v2833_v32  ;;  %v845_v45 = vpack.c.bf16 %v2844_v36, %v2844_v36  ;;  %v844_v47 = vpack.c.bf16 %v2843_v37, %v2843_v37 }
 0x2ae   : > { %v2847_v51 = vpop.permute.xlu1 %2846 }
 0x2af   : > { %v973_v38 = vsel %vm876_vm5, %v842_v35, 0  ;;  %v1019_v39 = vsel %vm876_vm5, %v843_v34, 0  ;;  %v2852_v48 = vpop.permute.xlu0 %2851  ;;  %v1065_v54 = vsel %vm876_vm5, %v844_v47, 0  ;;  %v1111_v55 = vsel %vm876_vm5, %v845_v45, 0 }
 0x2b0   : > { %2686 = vmatpush3.bf16.xpose.msra.mxu0 %v973_v38  ;;  %2692 = vmatpush3.bf16.xpose.msra.mxu1 %v1019_v39  ;;  %v2854_v52 = vunpack.i.h.bf16 %v2852_v48  ;;  %v2853_v53 = vunpack.i.l.bf16 %v2852_v48  ;;  %v2849_v56 = vunpack.i.h.bf16 %v2847_v51  ;;  %v2848_v57 = vunpack.i.l.bf16 %v2847_v51 }
 0x2b1   : > { %2697 = vmatprep.subr.bf16.mxu0 %v3017_v26  ;;  %2703 = vmatprep.subr.bf16.mxu1 %v3017_v26 }
 0x2b2   : > { %v847_v58 = vpack.c.bf16 %v2854_v52, %v2854_v52  ;;  %v846_v60 = vpack.c.bf16 %v2853_v53, %v2853_v53  ;;  %v817_v61 = vpack.c.bf16 %v2849_v56, %v2849_v56  ;;  %v816_v62 = vpack.c.bf16 %v2848_v57, %v2848_v57  ;;  %v2857_v63 = vpop.permute.xlu1 %2856 }
 0x2b3   : > { %v2859_v2 = vunpack.i.h.bf16 %v2857_v63  ;;  %v2858_v3 = vunpack.i.l.bf16 %v2857_v63 }
 0x2b4   : > { %v1157_v0 = vsel %vm876_vm5, %v846_v60, 0  ;;  %v1203_v1 = vsel %vm876_vm5, %v847_v58, 0 }
 0x2b5   : > { %v819_v6 = vpack.c.bf16 %v2859_v2, %v2859_v2  ;;  %v818_v9 = vpack.c.bf16 %v2858_v3, %v2858_v3 }
 0x2b7   : > { %2688 = vmatmul.mubr.msk.bf16.vlgmr.msra.gmra.mxu0 %vm876_vm5, %v814_v50  ;;  %2694 = vmatmul.mubr.msk.bf16.vlgmr.msra.gmra.mxu1 %vm876_vm5, %v815_v49 }
 0x2b8   : > { %2698 = vmatpush3.bf16.xpose.msra.mxu0 %v1065_v54  ;;  %2704 = vmatpush3.bf16.xpose.msra.mxu1 %v1111_v55 }
 0x2b9   : > { %2699 = vmatprep.mubr.msk.bf16.mxu0 %vm3018_vm4, %v3017_v26  ;;  %2705 = vmatprep.mubr.msk.bf16.mxu1 %vm3018_vm4, %v3017_v26 }
 0x2ba   : > { %2709 = vmatprep.subr.bf16.mxu0 %v3017_v26  ;;  %2715 = vmatprep.subr.bf16.mxu1 %v3017_v26 }
 0x2bf   : > { %2700 = vmatmul.mubr.msk.bf16.vlgmr.msra.gmra.mxu0 %vm876_vm5, %v816_v62  ;;  %2706 = vmatmul.mubr.msk.bf16.vlgmr.msra.gmra.mxu1 %vm876_vm5, %v817_v61 }
 0x2c0   : > { %2710 = vmatpush3.bf16.xpose.msra.mxu0 %v1157_v0  ;;  %2716 = vmatpush3.bf16.xpose.msra.mxu1 %v1203_v1 }
 0x2c1   : > { %2711 = vmatprep.mubr.msk.bf16.mxu0 %vm3018_vm4, %v3017_v26  ;;  %2717 = vmatprep.mubr.msk.bf16.mxu1 %vm3018_vm4, %v3017_v26 }
 0x2c2   : > { %2721 = vmatprep.subr.bf16.mxu0 %v3017_v26  ;;  %2727 = vmatprep.subr.bf16.mxu1 %v3017_v26 }
 0x2c7   : > { %2712 = vmatmul.mubr.msk.bf16.vlgmr.msra.gmra.mxu0 %vm876_vm5, %v818_v9  ;;  %2718 = vmatmul.mubr.msk.bf16.vlgmr.msra.gmra.mxu1 %vm876_vm5, %v819_v6 }
 0x2c8   : > { %2722 = vmatpush3.bf16.msra.mxu0 %v1364_v10  ;;  %2728 = vmatpush3.bf16.msra.mxu1 %v1410_v11 }
 0x2c9   : > { %2723 = vmatprep.mubr.msk.bf16.mxu0 %vm3018_vm4, %v3017_v26  ;;  %2729 = vmatprep.mubr.msk.bf16.mxu1 %vm3018_vm4, %v3017_v26 }
 0x2ca   : > { %2733 = vmatprep.subr.bf16.mxu0 %v3017_v26  ;;  %2739 = vmatprep.subr.bf16.mxu1 %v3017_v26 }
 0x2fc   : > { %v917_v7 = vpop.f32.mrf.mxu1 }
 0x2fd   : > { %v1245_v13 = vmul.f32 0.25, %v917_v7 }
 0x2fe   : > { %v2677_v14 = vpop.f32.mrf.mxu1 }
 0x2ff   : > { %v1254_v15 = vadd.f32 %v1253_v8, %v1245_v13 }
 0x300   : > { %v920_v16 = vpop.f32.mrf.mxu1 }
 0x301   : > { %v1263_v17 = vsel %vm1262_vm7, %v1254_v15, -inf }
 0x302   : > { %1264 = vmax.xlane.f32.xlu0 %v1263_v17  ;;  %v2678_v18 = vpop.f32.mrf.mxu1 }
 0x304   : > { %v963_v19 = vpop.f32.mrf.mxu1 }
 0x305   : > { %v1246_v20 = vmul.f32 0.25, %v963_v19 }
 0x306   : > { %v2683_v21 = vpop.f32.mrf.mxu1 }
 0x307   : > { %v1255_v22 = vadd.f32 %v1253_v8, %v1246_v20 }
 0x308   : > { %v966_v23 = vpop.f32.mrf.mxu1 }
 0x309   : > { %v1266_v24 = vsel %vm1262_vm7, %v1255_v22, -inf }
 0x30a   : > { %1267 = vmax.xlane.f32.xlu1 %v1266_v24  ;;  %v2684_v25 = vpop.f32.mrf.mxu1 }
 0x377   : > { %v1009_v27 = vpop.f32.mrf.mxu0  ;;  %v1055_v28 = vpop.f32.mrf.mxu1 }
 0x378   : > { %v1247_v29 = vmul.f32 0.25, %v1009_v27  ;;  %v1248_v30 = vmul.f32 0.25, %v1055_v28 }
 0x379   : > { %v2689_v31 = vpop.f32.mrf.mxu0  ;;  %v2695_v32 = vpop.f32.mrf.mxu1 }
 0x37a   : > { %v1256_v33 = vadd.f32 %v1253_v8, %v1247_v29  ;;  %v1257_v37 = vadd.f32 %v1253_v8, %v1248_v30 }
 0x37b   : > { %v1012_v34 = vpop.f32.mrf.mxu0  ;;  %v1058_v35 = vpop.f32.mrf.mxu1 }
 0x37c   : > { %v1269_v36 = vsel %vm1262_vm7, %v1256_v33, -inf  ;;  %v1272_v48 = vsel %vm1262_vm7, %v1257_v37, -inf }
 0x37d   : > { %v2690_v38 = vpop.f32.mrf.mxu0  ;;  %1270 = vmax.xlane.f32.xlu0 %v1269_v36  ;;  %v2696_v39 = vpop.f32.mrf.mxu1 }
 0x37f   : > { %v1101_v43 = vpop.f32.mrf.mxu0  ;;  %v1147_v44 = vpop.f32.mrf.mxu1 }
 0x380   : > { %v1249_v45 = vmul.f32 0.25, %v1101_v43  ;;  %v1250_v47 = vmul.f32 0.25, %v1147_v44 }
 0x381   : > { %v2701_v49 = vpop.f32.mrf.mxu0  ;;  %1273 = vmax.xlane.f32.xlu0 %v1272_v48  ;;  %v2707_v50 = vpop.f32.mrf.mxu1 }
 0x382   : > { %v1258_v51 = vadd.f32 %v1253_v8, %v1249_v45  ;;  %v1259_v52 = vadd.f32 %v1253_v8, %v1250_v47 }
 0x383   : > { %v1104_v53 = vpop.f32.mrf.mxu0  ;;  %v1150_v54 = vpop.f32.mrf.mxu1 }
 0x384   : > { %v1275_v55 = vsel %vm1262_vm7, %v1258_v51, -inf  ;;  %v1278_v56 = vsel %vm1262_vm7, %v1259_v52, -inf }
 0x385   : > { %v2702_v57 = vpop.f32.mrf.mxu0  ;;  %1276 = vmax.xlane.f32.xlu0 %v1275_v55  ;;  %1279 = vmax.xlane.f32.xlu1 %v1278_v56  ;;  %v2708_v58 = vpop.f32.mrf.mxu1 }
 0x387   : > { %v1193_v60 = vpop.f32.mrf.mxu0  ;;  %v1239_v61 = vpop.f32.mrf.mxu1 }
 0x388   : > { %v1251_v62 = vmul.f32 0.25, %v1193_v60  ;;  %v1252_v63 = vmul.f32 0.25, %v1239_v61 }
 0x389   : > { %v2713_v0 = vpop.f32.mrf.mxu0  ;;  %v2719_v1 = vpop.f32.mrf.mxu1 }
 0x38a   : > { %v1260_v2 = vadd.f32 %v1253_v8, %v1251_v62  ;;  %v3279_v3 = vadd.f32 %v1253_v8, %v1252_v63 }
 0x38b   : > { %v1196_v4 = vpop.f32.mrf.mxu0  ;;  %v1265_v5 = vpop.xlane.xlu0 %1264 }
 0x38c   : > { %v1287_v6 = vsub.f32 %v1254_v15, %v1265_v5  ;;  %v1242_v9 = vpop.f32.mrf.mxu1  ;;  %v1281_v10 = vsel %vm1262_vm7, %v1260_v2, -inf  ;;  %v1284_v11 = vsel %vm1262_vm7, %v3279_v3, -inf }
 0x38d   : > { %v2714_v7 = vpop.f32.mrf.mxu0  ;;  %1282 = vmax.xlane.f32.xlu0 %v1281_v10  ;;  %1285 = vmax.xlane.f32.xlu1 %v1284_v11 }
 0x38e   : > { %v1295_v13 = vmul.f32 1.442695, %v1287_v6  ;;  %v2720_v14 = vpop.f32.mrf.mxu1 }
 0x390   : > { %2938 = vpow2.f32 %v1295_v13 }
 0x393   : > { %v1268_v16 = vpop.xlane.xlu1 %1267 }
 0x394   : > { %v1288_v17 = vsub.f32 %v1255_v22, %v1268_v16 }
 0x396   : > { %v1297_v18 = vmul.f32 1.442695, %v1288_v17 }
 0x398   : > { %2940 = vpow2.f32 %v1297_v18 }
 0x39d   : > { %v2939_v8 = vpop.eup %2938 }
 0x39e   : > { %v1311_v19 = vsel %vm1262_vm7, %v2939_v8, 0.0 }
 0x39f   : > { %1312 = vadd.xlane.f32.xlu0 %v1311_v19 }
 0x3a5   : > { %v2941_v15 = vpop.eup %2940 }
 0x3a6   : > { %v1314_v20 = vsel %vm1262_vm7, %v2941_v15, 0.0 }
 0x3a7   : > { %1315 = vadd.xlane.f32.xlu1 %v1314_v20 }
 0x406   : > { %v1271_v21 = vpop.xlane.xlu0 %1270 }
 0x407   : > { %v1289_v23 = vsub.f32 %v1256_v33, %v1271_v21 }
 0x409   : > { %v1299_v24 = vmul.f32 1.442695, %v1289_v23 }
 0x40a   : > { %v1274_v25 = vpop.xlane.xlu0 %1273 }
 0x40b   : > { %2942 = vpow2.f32 %v1299_v24  ;;  %v1290_v27 = vsub.f32 %v1257_v37, %v1274_v25 }
 0x40d   : > { %v1301_v28 = vmul.f32 1.442695, %v1290_v27 }
 0x40e   : > { %v1277_v29 = vpop.xlane.xlu0 %1276  ;;  %v1280_v30 = vpop.xlane.xlu1 %1279 }
 0x40f   : > { %2944 = vpow2.f32 %v1301_v28  ;;  %v1291_v22 = vsub.f32 %v1258_v51, %v1277_v29  ;;  %v1292_v31 = vsub.f32 %v1259_v52, %v1280_v30 }
 0x411   : > { %v1303_v32 = vmul.f32 1.442695, %v1291_v22  ;;  %v1305_v34 = vmul.f32 1.442695, %v1292_v31 }
 0x413   : > { %2946 = vpow2.f32 %v1303_v32 }
 0x414   : > { %2948 = vpow2.f32 %v1305_v34 }
 0x416   : > { %v1283_v35 = vpop.xlane.xlu0 %1282  ;;  %v1286_v52 = vpop.xlane.xlu1 %1285 }
 0x417   : > { %v1293_v36 = vsub.f32 %v1260_v2, %v1283_v35  ;;  %v1294_v58 = vsub.f32 %v3279_v3, %v1286_v52 }
 0x418   : > { %v2943_v38 = vpop.eup %2942 }
 0x419   : > { %v1307_v39 = vmul.f32 1.442695, %v1293_v36  ;;  %v1317_v33 = vsel %vm1262_vm7, %v2943_v38, 0.0  ;;  %v1309_v62 = vmul.f32 1.442695, %v1294_v58 }
 0x41a   : > { %1318 = vadd.xlane.f32.xlu0 %v1317_v33 }
 0x41b   : > { %2950 = vpow2.f32 %v1307_v39 }
 0x41c   : > { %v2945_v43 = vpop.eup %2944 }
 0x41d   : > { %v1320_v37 = vsel %vm1262_vm7, %v2945_v43, 0.0 }
 0x41e   : > { %1321 = vadd.xlane.f32.xlu1 %v1320_v37 }
 0x420   : > { %v3288_v44 = vpop.eup %2946 }
 0x421   : > { %v3290_v45 = vpop.eup %2948  ;;  %v1323_v47 = vsel %vm1262_vm7, %v3288_v44, 0.0 }
 0x422   : > { %1324 = vadd.xlane.f32.xlu0 %v1323_v47  ;;  %v1326_v48 = vsel %vm1262_vm7, %v3290_v45, 0.0 }
 0x423   : > { %1327 = vadd.xlane.f32.xlu1 %v1326_v48 }
 0x428   : > { %v3296_v49 = vpop.eup %2950  ;;  %v1313_v50 = vpop.xlane.xlu0 %1312 }
 0x429   : > { %2952 = vrcp.f32 %v1313_v50  ;;  %v1329_v51 = vsel %vm1262_vm7, %v3296_v49, 0.0 }
 0x42a   : > { %1330 = vadd.xlane.f32.xlu0 %v1329_v51 }
 0x430   : > { %v1316_v53 = vpop.xlane.xlu1 %1315 }
 0x431   : > { %2954 = vrcp.f32 %v1316_v53 }
 0x432   : > { %2956 = vpow2.f32 %v1309_v62  ;;  %v2902_v62 = vld [vmem:[%s3108_s22 + $0x18] sm:$0xff]  }
 0x434   : > { %2866 = vrot.lane.b32.xlu1 %v3215_v12, %s3020_s26 }
 0x436   : > { %v2953_v54 = vpop.eup %2952 }
 0x437   : > { %v1343_v55 = vmul.f32 %v2953_v54, %v2939_v8 }
 0x439   : > { %v1351_v56 = vpack.c.bf16 %v1343_v55, %v1343_v55 }
 0x43b   : > { %2724 = vmatmul.mubr.msk.bf16.vlgmr.msra.gmra.mxu0 %vm1262_vm7, %v1351_v56 }
 0x43c   : > { %2735 = vmatprep.mubr.msk.bf16.mxu0 %vm3018_vm4, %v3017_v26 }
 0x43e   : > { %v2955_v57 = vpop.eup %2954 }
 0x43f   : > { %v1344_v60 = vmul.f32 %v2955_v57, %v2941_v15  ;;  %v3311_v63 = vpop.eup %2956 }
 0x440   : > { %2861 = vrot.lane.b32.xlu0 %v3215_v12, %s3019_s17  ;;  %v1332_v0 = vsel %vm1262_vm7, %v3311_v63, 0.0 }
 0x441   : > { %v1352_v61 = vpack.c.bf16 %v1344_v60, %v1344_v60 }
 0x443   : > { %2730 = vmatmul.mubr.msk.bf16.vlgmr.msra.gmra.mxu1 %vm1262_vm7, %v1352_v61 }
 0x444   : > { %2741 = vmatprep.mubr.msk.bf16.mxu1 %vm3018_vm4, %v3017_v26 }
 0x458   : > { %1333 = vadd.xlane.f32.xlu1 %v1332_v0 }
 0x469   : > { %2871 = vrot.lane.b32.xlu1 %v3215_v12, %s3021_s12 }
 0x4a3   : > { %v1319_v1 = vpop.xlane.xlu0 %1318 }
 0x4a4   : > { %2958 = vrcp.f32 %v1319_v1 }
 0x4a7   : > { %v1322_v2 = vpop.xlane.xlu1 %1321 }
 0x4a8   : > { %2960 = vrcp.f32 %v1322_v2  ;;  %v2903_v2 = vld [vmem:[%s3108_s22 + $0x10] sm:$0xff]  }
 0x4ab   : > { %v1325_v3 = vpop.xlane.xlu0 %1324 }
 0x4ac   : > { %v1328_v4 = vpop.xlane.xlu1 %1327  ;;  %2962 = vrcp.f32 %v1325_v3 }
 0x4ad   : > { %2964 = vrcp.f32 %v1328_v4 }
 0x4b0   : > { %v2867_v6 = vpop.permute.xlu1 %2866 }
 0x4b1   : > { %v2959_v9 = vpop.eup %2958  ;;  %v2869_v7 = vunpack.i.h.bf16 %v2867_v6  ;;  %v2868_v13 = vunpack.i.l.bf16 %v2867_v6 }
 0x4b2   : > { %v1345_v12 = vmul.f32 %v2959_v9, %v2943_v38  ;;  %v2904_v9 = vld [vmem:[%s3108_s22 + $0x8] sm:$0xff]  }
 0x4b3   : > { %v1331_v5 = vpop.xlane.xlu0 %1330  ;;  %v873_v19 = vpack.c.bf16 %v2869_v7, %v2869_v7  ;;  %v872_v15 = vpack.c.bf16 %v2868_v13, %v2868_v13 }
 0x4b4   : > { %v1353_v24 = vpack.c.bf16 %v1345_v12, %v1345_v12  ;;  %2966 = vrcp.f32 %v1331_v5 }
 0x4b5   : > { %v2961_v10 = vpop.eup %2960  ;;  %v1548_v28 = vsel %vm1362_vm6, %v872_v15, 0  ;;  %v1594_v29 = vsel %vm1362_vm6, %v873_v19, 0 }
 0x4b6   : > { %v1346_v8 = vmul.f32 %v2961_v10, %v2945_v43 }
 0x4b7   : > { %v2862_v11 = vpop.permute.xlu0 %2861 }
 0x4b8   : > { %v2864_v14 = vunpack.i.h.bf16 %v2862_v11  ;;  %v2863_v16 = vunpack.i.l.bf16 %v2862_v11  ;;  %v1354_v25 = vpack.c.bf16 %v1346_v8, %v1346_v8  ;;  %v2905_v8 = vld [vmem:[%s3108_s22] sm:$0xff]  }
 0x4b9   : > { %v2963_v23 = vpop.eup %2962 }
 0x4ba   : > { %v871_v17 = vpack.c.bf16 %v2864_v14, %v2864_v14  ;;  %v870_v18 = vpack.c.bf16 %v2863_v16, %v2863_v16  ;;  %v2965_v27 = vpop.eup %2964  ;;  %v1347_v30 = vmul.f32 %v2963_v23, %v3288_v44 }
 0x4bb   : > { %v1348_v22 = vmul.f32 %v2965_v27, %v3290_v45 }
 0x4bc   : > { %v1456_v20 = vsel %vm1362_vm6, %v870_v18, 0  ;;  %v1502_v21 = vsel %vm1362_vm6, %v871_v17, 0  ;;  %v1355_v31 = vpack.c.bf16 %v1347_v30, %v1347_v30 }
 0x4bd   : > { %2734 = vmatpush3.bf16.msra.mxu0 %v1456_v20  ;;  %2740 = vmatpush3.bf16.msra.mxu1 %v1502_v21  ;;  %v1356_v32 = vpack.c.bf16 %v1348_v22, %v1348_v22 }
 0x4be   : > { %2745 = vmatprep.subr.bf16.mxu0 %v3017_v26  ;;  %2751 = vmatprep.subr.bf16.mxu1 %v3017_v26 }
 0x4c0   : > { %2736 = vmatmul.mubr.msk.bf16.vlgmr.msra.gmra.mxu0 %vm1262_vm7, %v1353_v24  ;;  %2742 = vmatmul.mubr.msk.bf16.vlgmr.msra.gmra.mxu1 %vm1262_vm7, %v1354_v25 }
 0x4c1   : > { %2746 = vmatpush3.bf16.msra.mxu0 %v1548_v28  ;;  %2752 = vmatpush3.bf16.msra.mxu1 %v1594_v29  ;;  %v2967_v35 = vpop.eup %2966 }
 0x4c2   : > { %2747 = vmatprep.mubr.msk.bf16.mxu0 %vm3018_vm4, %v3017_v26  ;;  %2753 = vmatprep.mubr.msk.bf16.mxu1 %vm3018_vm4, %v3017_v26  ;;  %v1349_v37 = vmul.f32 %v2967_v35, %v3296_v49 }
 0x4c3   : > { %2757 = vmatprep.subr.bf16.mxu0 %v3017_v26  ;;  %2763 = vmatprep.subr.bf16.mxu1 %v3017_v26 }
 0x4c4   : > { %v1357_v47 = vpack.c.bf16 %v1349_v37, %v1349_v37 }
 0x4c8   : > { %2748 = vmatmul.mubr.msk.bf16.vlgmr.msra.gmra.mxu0 %vm1262_vm7, %v1355_v31  ;;  %2754 = vmatmul.mubr.msk.bf16.vlgmr.msra.gmra.mxu1 %vm1262_vm7, %v1356_v32 }
 0x4c9   : > { %2759 = vmatprep.mubr.msk.bf16.mxu0 %vm3018_vm4, %v3017_v26  ;;  %2765 = vmatprep.mubr.msk.bf16.mxu1 %vm3018_vm4, %v3017_v26 }
 0x4e1   : > { %v1334_v34 = vpop.xlane.xlu1 %1333 }
 0x4e2   : > { %2968 = vrcp.f32 %v1334_v34 }
 0x4e5   : > { %v2872_v36 = vpop.permute.xlu1 %2871 }
 0x4e6   : > { %v2874_v38 = vunpack.i.h.bf16 %v2872_v36  ;;  %v2873_v39 = vunpack.i.l.bf16 %v2872_v36 }
 0x4e8   : > { %v875_v33 = vpack.c.bf16 %v2874_v38, %v2874_v38  ;;  %v874_v43 = vpack.c.bf16 %v2873_v39, %v2873_v39 }
 0x4ea   : > { %v1640_v44 = vsel %vm1362_vm6, %v874_v43, 0  ;;  %v1686_v45 = vsel %vm1362_vm6, %v875_v33, 0 }
 0x4eb   : > { %2758 = vmatpush3.bf16.msra.mxu0 %v1640_v44  ;;  %2764 = vmatpush3.bf16.msra.mxu1 %v1686_v45 }
 0x4ec   : > { %2769 = vmatprep.subr.bf16.mxu0 %v3017_v26 }
 0x4ee   : > { %2760 = vmatmul.mubr.msk.bf16.vlgmr.msra.gmra.mxu0 %vm1262_vm7, %v1357_v47  ;;  %v1771_v47 = vsub.s32 5, %v3171_v40 }
 0x4ef   : > { %v2969_v48 = vpop.eup %2968  ;;  %2777 = vmatprep.mubr.msk.bf16.mxu0 %vm3018_vm4, %v3017_v26  ;;  %2770 = vmatpush3.bf16.msra.mxu0 %v2902_v62 }
 0x4f0   : > { %v1350_v50 = vmul.f32 %v2969_v48, %v3311_v63  ;;  %2771 = vmatprep.subr.bf16.mxu0 %v3017_v26  ;;  %v1772_v48 = vrot.slane %v3177_v42, %v1771_v47  ;;  %v2926_v47 = vld [vmem:[%s3123_s14 + $0x58] sm:$0xff]  }
 0x4f2   : > { %v1358_v51 = vpack.c.bf16 %v1350_v50, %v1350_v50 }
 0x4f3   : > { %2772 = vmatpush3.bf16.msra.mxu0 %v2903_v2 }
 0x4f4   : > { %2766 = vmatmul.mubr.msk.bf16.vlgmr.msra.gmra.mxu1 %vm1262_vm7, %v1358_v51  ;;  %2773 = vmatprep.subr.bf16.mxu0 %v3017_v26 }
 0x4f7   : > { %2774 = vmatpush3.bf16.msra.mxu0 %v2904_v9 }
 0x4f8   : > { %2775 = vmatprep.subr.bf16.mxu0 %v3017_v26 }
 0x4fb   : > { %v3348_v49 = vpop.f32.mrf.mxu0  ;;  %2776 = vmatpush3.bf16.msra.mxu0 %v2905_v8 }
 0x4fd   : > { %v2725_v52 = vpop.f32.mrf.mxu0 }
 0x4ff   : > { %v1403_v53 = vpop.f32.mrf.mxu0 }
 0x500   : > { %v2982_v53 = vld [vmem:[#allocation2] sm:$0xff] }
 0x501   : > { %v2726_v54 = vpop.f32.mrf.mxu0 }
 0x503   : > { %v1446_v55 = vpop.f32.mrf.mxu1 }
 0x505   : > { %v2731_v56 = vpop.f32.mrf.mxu1 }
 0x507   : > { %v1449_v57 = vpop.f32.mrf.mxu1 }
 0x509   : > { %v2732_v58 = vpop.f32.mrf.mxu1 }
 0x50a   : > { %v2983_v58 = vld [vmem:[#allocation2 + $0x8] sm:$0xff] }
 0x580   : > { %v1492_v60 = vpop.f32.mrf.mxu0  ;;  %v1538_v61 = vpop.f32.mrf.mxu1 }
 0x581   : > { %v2875_v0 = vpack.i.bf16 %v1538_v61, %v1492_v60 }
 0x582   : > { %v2737_v1 = vpop.f32.mrf.mxu0  ;;  %v2743_v63 = vpop.f32.mrf.mxu1 }
 0x583   : > { %2876 = vrot.lane.b32.xlu1 %v2875_v0, %s3022_s19 }
 0x584   : > { %v1495_v3 = vpop.f32.mrf.mxu0  ;;  %v1541_v4 = vpop.f32.mrf.mxu1 }
 0x586   : > { %v2738_v5 = vpop.f32.mrf.mxu0  ;;  %v2744_v6 = vpop.f32.mrf.mxu1 }
 0x588   : > { %v1584_v10 = vpop.f32.mrf.mxu0  ;;  %v1630_v11 = vpop.f32.mrf.mxu1 }
 0x589   : > { %v2880_v7 = vpack.i.bf16 %v1630_v11, %v1584_v10  ;;  %v2908_v10 = vld [vmem:[%s3118_s29 + $0x34] ss:$8 sps:$4 sm:$0xff]   ;;  %v2906_v11 = vld [vmem:[%s3118_s29 + $0x30] ss:$8 sps:$4 sm:$0xff]  }
 0x58a   : > { %v2749_v13 = vpop.f32.mrf.mxu0  ;;  %v2755_v14 = vpop.f32.mrf.mxu1  ;;  %1953 = vmatprep.subr.bf16.mxu1 %v2908_v10 }
 0x58b   : > { %2881 = vrot.lane.b32.xlu0 %v2880_v7, %s3023_s20  ;;  %1954 = vmatpush1.bf16.msra.mxu1 %v2906_v11  ;;  %v2911_v7 = vld [vmem:[%s3118_s29 + $0x24] ss:$8 sps:$4 sm:$0xff]   ;;  %v2909_v13 = vld [vmem:[%s3118_s29 + $0x20] ss:$8 sps:$4 sm:$0xff]   ;;  %v2914_v14 = vld [vmem:[%s3118_s29 + $0x14] ss:$8 sps:$4 sm:$0xff]  }
 0x58c   : > { %v1587_v16 = vpop.f32.mrf.mxu0  ;;  %v1633_v17 = vpop.f32.mrf.mxu1  ;;  %1955 = vmatprep.subr.bf16.mxu1 %v2911_v7 }
 0x58d   : > { %v2912_v16 = vld [vmem:[%s3118_s29 + $0x10] ss:$8 sps:$4 sm:$0xff]   ;;  %v2917_v17 = vld [vmem:[%s3118_s29 + $0x4] ss:$8 sps:$4 sm:$0xff]  }
 0x58e   : > { %v2750_v18 = vpop.f32.mrf.mxu0  ;;  %v2756_v12 = vpop.f32.mrf.mxu1 }
 0x58f   : > { %1956 = vmatpush1.bf16.msra.mxu1 %v2909_v13  ;;  %v2915_v18 = vld [vmem:[%s3118_s29] ss:$8 sps:$4 sm:$0xff]   ;;  %v3025_v12 = vmov 0  }
 0x590   : > { %1957 = vmatprep.subr.bf16.mxu1 %v2914_v14  ;;  %1977 = vmatprep.mubr.bf16.mxu1 %v3025_v12 }
 0x593   : > { %1958 = vmatpush1.bf16.msra.mxu1 %v2912_v16 }
 0x594   : > { %1959 = vmatprep.subr.bf16.mxu1 %v2917_v17 }
 0x597   : > { %1960 = vmatpush1.bf16.msra.mxu1 %v2915_v18 }
 0x5ae   : > { %v1676_v19 = vpop.f32.mrf.mxu0 }
 0x5b0   : > { %v2761_v15 = vpop.f32.mrf.mxu0 }
 0x5b2   : > { %v1679_v20 = vpop.f32.mrf.mxu0 }
 0x5b4   : > { %v2762_v21 = vpop.f32.mrf.mxu0  ;;  %v1722_v23 = vpop.f32.mrf.mxu1 }
 0x5b5   : > { %v2885_v24 = vpack.i.bf16 %v1722_v23, %v1676_v19 }
 0x5b6   : > { %v2767_v25 = vpop.f32.mrf.mxu1 }
 0x5b7   : > { %2886 = vrot.lane.b32.xlu1 %v2885_v24, %s3024_s24  ;;  %v1871_v24 = vsub.s32 6, %v3171_v40 }
 0x5b8   : > { %v1725_v27 = vpop.f32.mrf.mxu1 }
 0x5ba   : > { %v2768_v28 = vpop.f32.mrf.mxu1 }
 0x5bb   : > { %v1872_v28 = vrot.slane %v3177_v42, %v1871_v24 }
 0x5f5   : > { %v2877_v29 = vpop.permute.xlu1 %2876 }
 0x5f6   : > { %v2879_v26 = vunpack.i.h.bf16 %v2877_v29  ;;  %v2878_v22 = vunpack.i.l.bf16 %v2877_v29  ;;  %v1877_v29 = vsub.s32 7, %v3171_v40 }
 0x5f8   : > { %v1753_v35 = vsel %vm876_vm5, %v1446_v55, %v2879_v26  ;;  %v1752_v36 = vsel %vm876_vm5, %v3348_v49, %v2878_v22 }
 0x5fd   : > { %v2882_v30 = vpop.permute.xlu0 %2881 }
 0x5fe   : > { %v2884_v31 = vunpack.i.h.bf16 %v2882_v30  ;;  %v2883_v32 = vunpack.i.l.bf16 %v2882_v30 }
 0x600   : > { %v1756_v33 = vsel %vm1754_vm8, %v1753_v35, %v2884_v31  ;;  %v1755_v43 = vsel %vm1754_vm8, %v1752_v36, %v2883_v32  ;;  %v1878_v31 = vrot.slane %v3177_v42, %v1877_v29  ;;  %v2922_v42 = vld [vmem:[%s3123_s14 + $0x68] sm:$0xff]  }
 0x629   : > { %v2887_v34 = vpop.permute.xlu1 %2886 }
 0x62a   : > { %v2889_v38 = vunpack.i.h.bf16 %v2887_v34  ;;  %v2888_v39 = vunpack.i.l.bf16 %v2887_v34 }
 0x62c   : > { %v1759_v37 = vsel %vm1757_vm9, %v1756_v33, %v2889_v38  ;;  %v1758_v44 = vsel %vm1757_vm9, %v1755_v43, %v2888_v39  ;;  %v2918_v38 = vld [vmem:[%s3123_s14 + $0x78] sm:$0xff]   ;;  %v2920_v33 = vld [vmem:[%s3123_s14 + $0x70] sm:$0xff]  }
 0x62d   : > { %v1760_v45 = vpack.c.bf16 %v1759_v37, %v1758_v44  ;;  %v2919_v39 = vld [vmem:[%s3123_s14 + $0x38] sm:$0xff]   ;;  %2610 = vmatprep.subr.bf16.mxu0 %v2918_v38  ;;  %v2921_v43 = vld [vmem:[%s3123_s14 + $0x30] sm:$0xff]   ;;  %v2923_v37 = vld [vmem:[%s3123_s14 + $0x28] sm:$0xff]  }
 0x62e   : > { %v2924_v44 = vld [vmem:[%s3123_s14 + $0x60] sm:$0xff]  }
 0x62f   : > { %2778 = vmatmul.mubr.msk.bf16.vlgmr.msra.gmra.mxu0 %vm541_vm3, %v1760_v45  ;;  %v2925_v45 = vld [vmem:[%s3123_s14 + $0x20] sm:$0xff]  }
 0x630   : > { %2611 = vmatpush3.bf16.msra.mxu0 %v2919_v39 }
 0x631   : > { %2612 = vmatprep.subr.bf16.mxu0 %v2920_v33 }
 0x634   : > { %2613 = vmatpush3.bf16.msra.mxu0 %v2921_v43 }
 0x635   : > { %2614 = vmatprep.subr.bf16.mxu0 %v2922_v42 }
 0x638   : > { %2615 = vmatpush3.bf16.msra.mxu0 %v2923_v37 }
 0x639   : > { %2616 = vmatprep.subr.bf16.mxu0 %v2924_v44 }
 0x63c   : > { %2617 = vmatpush3.bf16.msra.mxu0 %v2925_v45 }
 0x63d   : > { %2618 = vmatprep.subr.bf16.mxu0 %v2926_v47  ;;  %v2527_v47 = vld [vmem:[%s3133_s2 + $0x8] ss:$0 sm:$0xff] }
 0x6ef   : > { %v1834_v50 = vpop.f32.mrf.mxu0 }
 0x6f0   : > { %v1835_v51 = vadd.f32 %v1834_v50, %v1772_v48  ;;  %v2928_v50 = vld [vmem:[%s3123_s14 + $0x50] sm:$0xff]  }
 0x6f1   : > { %v2779_v52 = vpop.f32.mrf.mxu0 }
 0x6f2   : > { %v3363_v54 = vadd.f32 %v2982_v53, %v1835_v51  ;;  %v2929_v51 = vld [vmem:[%s3123_s14 + $0x10] sm:$0xff]   ;;  %v2930_v52 = vld [vmem:[%s3123_s14 + $0x48] sm:$0xff]  }
 0x6f3   : > { %v1837_v49 = vpop.f32.mrf.mxu0  ;;  %v2931_v53 = vld [vmem:[%s3123_s14 + $0x8] sm:$0xff]  }
 0x6f4   : > { %v1838_v55 = vadd.f32 %v1837_v49, %v1772_v48  ;;  %v1843_v56 = vsel %vm541_vm3, %v3363_v54, 0.0  ;;  %v2927_v48 = vld [vmem:[%s3123_s14 + $0x18] sm:$0xff]   ;;  %v2932_v49 = vld [vmem:[%s3123_s14 + $0x40] sm:$0xff]  }
 0x6f5   : > { %1844 = vadd.xlane.f32.xlu0 %v1843_v56  ;;  %v2780_v57 = vpop.f32.mrf.mxu0  ;;  %2619 = vmatpush3.bf16.msra.mxu0 %v2927_v48  ;;  %v1890_v56 = vld [vmem:[%s3128_s21] sm:$0x3] }
 0x6f6   : > { %v3367_v60 = vadd.f32 %v2983_v58, %v1838_v55  ;;  %2620 = vmatprep.subr.bf16.mxu0 %v2928_v50  ;;  %v2933_v55 = vld [vmem:[%s3123_s14] sm:$0xff]   ;;  %v1895_v57 = vrot.slane %v1890_v56, %v3174_v41  ;;  %v1899_v58 = vrot.slane %v1890_v56, %v3182_v46 }
 0x6f8   : > { %v1846_v61 = vsel %vm541_vm3, %v3367_v60, 0.0 }
 0x6f9   : > { %1847 = vadd.xlane.f32.xlu1 %v1846_v61  ;;  %2621 = vmatpush3.bf16.msra.mxu0 %v2929_v51 }
 0x6fa   : > { %2622 = vmatprep.subr.bf16.mxu0 %v2930_v52 }
 0x6fd   : > { %2623 = vmatpush3.bf16.msra.mxu0 %v2931_v53 }
 0x6fe   : > { %2624 = vmatprep.subr.bf16.mxu0 %v2932_v49 }
 0x701   : > { %2625 = vmatpush3.bf16.msra.mxu0 %v2933_v55 }
 0x77e   : > { %v1845_v62 = vpop.xlane.xlu0 %1844 }
 0x77f   : > { %v1849_v0 = vmul.f32 0.015625, %v1845_v62 }
 0x781   : > { %v1851_v1 = vsub.f32 %v3363_v54, %v1849_v0 }
 0x782   : > { %v1848_v63 = vpop.xlane.xlu1 %1847 }
 0x783   : > { %v1850_v2 = vmul.f32 0.015625, %v1848_v63  ;;  %v1853_v3 = vmul.f32 %v1851_v1, %v1851_v1 }
 0x785   : > { %v1852_v4 = vsub.f32 %v3367_v60, %v1850_v2  ;;  %v1855_v5 = vsel %vm541_vm3, %v1853_v3, 0.0 }
 0x786   : > { %1856 = vadd.xlane.f32.xlu0 %v1855_v5 }
 0x787   : > { %v1854_v6 = vmul.f32 %v1852_v4, %v1852_v4 }
 0x789   : > { %v1858_v9 = vsel %vm541_vm3, %v1854_v6, 0.0 }
 0x78a   : > { %1859 = vadd.xlane.f32.xlu0 %v1858_v9 }
 0x80f   : > { %v1857_v8 = vpop.xlane.xlu0 %1856 }
 0x810   : > { %v1861_v19 = vmul.f32 0.015625, %v1857_v8 }
 0x812   : > { %v1863_v15 = vadd.f32 1e-05, %v1861_v19 }
 0x813   : > { %v1860_v20 = vpop.xlane.xlu0 %1859 }
 0x814   : > { %2970 = vrsqrt.f32 %v1863_v15  ;;  %v1862_v21 = vmul.f32 0.015625, %v1860_v20 }
 0x816   : > { %v1864_v23 = vadd.f32 1e-05, %v1862_v21 }
 0x818   : > { %2972 = vrsqrt.f32 %v1864_v23 }
 0x821   : > { %v2971_v25 = vpop.eup %2970 }
 0x822   : > { %v1867_v27 = vmul.f32 %v2971_v25, %v1851_v1 }
 0x824   : > { %v1873_v22 = vmul.f32 %v1872_v28, %v1867_v27 }
 0x825   : > { %v2973_v30 = vpop.eup %2972 }
 0x826   : > { %v1868_v26 = vmul.f32 %v2973_v30, %v1852_v4  ;;  %v1879_v34 = vadd.f32 %v1878_v31, %v1873_v22 }
 0x828   : > { %v1874_v32 = vmul.f32 %v1872_v28, %v1868_v26 }
 0x82a   : > { %v1880_v35 = vadd.f32 %v1878_v31, %v1874_v32 }
 0x82c   : > { %v1881_v36 = vpack.c.bf16 %v1880_v35, %v1879_v34 }
 0x82e   : > { %2526 = vmatmul.mubr.msk.bf16.vlgmr.msra.gmra.mxu1 %vm541_vm3, %v1881_v36 }
 0x8ee   : > { %v1979_v61 = vpop.f32.mrf.mxu1 }
 0x8ef   : > { %v1980_v62 = vadd.f32 %v1979_v61, %v1895_v57 }
 0x8f0   : > { %v1981_v0 = vpop.f32.mrf.mxu1 }
 0x8f1   : > { %v1988_v1 = vmul.f32 %v1980_v62, %v1980_v62  ;;  %v1982_v63 = vadd.f32 %v1981_v0, %v1899_v58 }
 0x8f2   : > { %v1983_v2 = vpop.f32.mrf.mxu1 }
 0x8f3   : > { %v1992_v3 = vmul.f32 %v1988_v1, %v1980_v62  ;;  %v1989_v4 = vmul.f32 %v1982_v63, %v1982_v63  ;;  %v1984_v5 = vadd.f32 %v1983_v2, %v1895_v57 }
 0x8f4   : > { %v1985_v6 = vpop.f32.mrf.mxu1 }
 0x8f5   : > { %v1996_v9 = vmul.f32 0.044715, %v1992_v3  ;;  %v1993_v10 = vmul.f32 %v1989_v4, %v1982_v63  ;;  %v1990_v11 = vmul.f32 %v1984_v5, %v1984_v5  ;;  %v1986_v7 = vadd.f32 %v1985_v6, %v1899_v58 }
 0x8f7   : > { %v2000_v13 = vadd.f32 %v1996_v9, %v1980_v62  ;;  %v1997_v14 = vmul.f32 0.044715, %v1993_v10  ;;  %v1994_v16 = vmul.f32 %v1990_v11, %v1984_v5  ;;  %v1991_v17 = vmul.f32 %v1986_v7, %v1986_v7 }
 0x8f9   : > { %v2004_v18 = vmul.f32 0.7978846, %v2000_v13  ;;  %v2001_v12 = vadd.f32 %v1997_v14, %v1982_v63  ;;  %v1998_v8 = vmul.f32 0.044715, %v1994_v16  ;;  %v1995_v19 = vmul.f32 %v1991_v17, %v1986_v7 }
 0x8fb   : > { %v2005_v15 = vmul.f32 0.7978846, %v2001_v12  ;;  %v2002_v20 = vadd.f32 %v1998_v8, %v1984_v5  ;;  %v1999_v21 = vmul.f32 0.044715, %v1995_v19  ;;  %2974 = vtanh.f32 %v2004_v18 }
 0x8fd   : > { %2976 = vtanh.f32 %v2005_v15  ;;  %v2006_v23 = vmul.f32 0.7978846, %v2002_v20  ;;  %v2003_v24 = vadd.f32 %v1999_v21, %v1986_v7 }
 0x8ff   : > { %2978 = vtanh.f32 %v2006_v23  ;;  %v2007_v25 = vmul.f32 0.7978846, %v2003_v24 }
 0x901   : > { %2980 = vtanh.f32 %v2007_v25 }
 0x908   : > { %v2975_v27 = vpop.eup %2974 }
 0x909   : > { %v2012_v26 = vadd.f32 1.0, %v2975_v27 }
 0x90a   : > { %v2977_v28 = vpop.eup %2976 }
 0x90b   : > { %v2013_v29 = vadd.f32 1.0, %v2977_v28  ;;  %v2016_v36 = vmul.f32 0.5, %v2012_v26 }
 0x90c   : > { %v2979_v30 = vpop.eup %2978 }
 0x90d   : > { %v2014_v22 = vadd.f32 1.0, %v2979_v30  ;;  %v2017_v35 = vmul.f32 0.5, %v2013_v29  ;;  %v2020_v42 = vmul.f32 %v2016_v36, %v1980_v62 }
 0x90e   : > { %v2981_v31 = vpop.eup %2980 }
 0x90f   : > { %v2018_v32 = vmul.f32 0.5, %v2014_v22  ;;  %v2015_v34 = vadd.f32 1.0, %v2981_v31  ;;  %v2021_v33 = vmul.f32 %v2017_v35, %v1982_v63 }
 0x911   : > { %v2019_v38 = vmul.f32 0.5, %v2015_v34  ;;  %v2022_v39 = vmul.f32 %v2018_v32, %v1984_v5 }
 0x913   : > { %v2023_v43 = vmul.f32 %v2019_v38, %v1986_v7  ;;  %v2024_v44 = vpack.c.bf16 %v2022_v39, %v2020_v42 }
 0x915   : > { %v2025_v37 = vpack.c.bf16 %v2023_v43, %v2021_v33 }
 0x917   : > { %2190 = vmatprep.mubr.bf16.mxu0 %v2025_v37 }
 0x918   : > { %2191 = vmatmul.mubr.bf16.vlgmr.msra.gmra.mxu0 %v2024_v44 }
 0x9d8   : > { %v2626_v45 = vpop.f32.mrf.mxu0 }
 0x9da   : > { %v2627_v48 = vpop.f32.mrf.mxu0 }
 0x9db   : > { %v2628_v50 = vadd.f32 %v2627_v48, %v2626_v45 }
 0x9dc   : > { %v2629_v51 = vpop.f32.mrf.mxu0 }
 0x9dd   : > { %v2193_v52 = vadd.f32 %v2628_v50, %v2527_v47 }
 0x9de   : > { %v2630_v53 = vpop.f32.mrf.mxu0 }
 0x9df   : > { %v2199_v49 = vadd.f32 %v2193_v52, %v3363_v54  ;;  %v2631_v55 = vadd.f32 %v2630_v53, %v2629_v51 }
 0x9e1   : > { %2201 = vst.msk [vmem:[#allocation2] sm:$0xff] %vm541_vm3, %v2199_v49  ;;  %v2196_v56 = vadd.f32 %v2631_v55, %v2527_v47  ;;  %2206 = sbr.rel (%p2544_p6) target bundleno = 3048 (0xbe8), region = 68 }
 0x9e3   : > { %v2200_v57 = vadd.f32 %v2196_v56, %v3367_v60 }
 0x9e5   : > { %2202 = vst.msk [vmem:[#allocation2 + $0x8] sm:$0xff] %vm541_vm3, %v2200_v57 }
 0x9e6   : > { %v2208_v58 = vsel %vm541_vm3, %v2199_v49, 0.0  ;;  %v2211_v61 = vsel %vm541_vm3, %v2200_v57, 0.0  ;;  %v2984_v6 = vld [vmem:[%s3463_s9 + $0x18] sm:$0xff]   ;;  %v3026_v9 = vmov 0.0   ;;  %vm3027_vm10 = vmmov 0   ;;  %v2985_v10 = vld [vmem:[%s3463_s9 + $0x10] sm:$0xff]  }
 0x9e7   : > { %2209 = vadd.xlane.f32.xlu0 %v2208_v58  ;;  %2781 = vmatprep.subr.bf16.mxu0 %v3026_v9  ;;  %v2986_v11 = vld [vmem:[%s3463_s9 + $0x8] sm:$0xff]   ;;  %v2987_v7 = vld [vmem:[%s3463_s9] sm:$0xff]  }
 0x9e8   : > { %2789 = vmatprep.mubr.msk.bf16.mxu0 %vm3027_vm10, %v3026_v9  ;;  %2782 = vmatpush3.bf16.msra.mxu0 %v2984_v6  ;;  %v2207_v8 = vld [vmem:[%s3462_s8] sm:$0x7] }
 0x9e9   : > { %2783 = vmatprep.subr.bf16.mxu0 %v3026_v9  ;;  %v2237_v20 = vrot.slane %v2207_v8, %v3174_v41  ;;  %v2243_v25 = vrot.slane %v2207_v8, %v3182_v46  ;;  %v2258_v26 = vrot.slane %v2207_v8, %v584_v59 }
 0x9eb   : > { %2212 = vadd.xlane.f32.xlu0 %v2211_v61 }
 0x9ec   : > { %2784 = vmatpush3.bf16.msra.mxu0 %v2985_v10 }
 0x9ed   : > { %2785 = vmatprep.subr.bf16.mxu0 %v3026_v9 }
 0x9f0   : > { %2786 = vmatpush3.bf16.msra.mxu0 %v2986_v11 }
 0x9f1   : > { %2787 = vmatprep.subr.bf16.mxu0 %v3026_v9 }
 0x9f4   : > { %2788 = vmatpush3.bf16.msra.mxu0 %v2987_v7 }
 0xa70   : > { %v2210_v62 = vpop.xlane.xlu0 %2209 }
 0xa71   : > { %v2214_v0 = vmul.f32 0.015625, %v2210_v62 }
 0xa73   : > { %v2216_v54 = vsub.f32 %v2199_v49, %v2214_v0 }
 0xa74   : > { %v2213_v1 = vpop.xlane.xlu0 %2212 }
 0xa75   : > { %v2215_v63 = vmul.f32 0.015625, %v2213_v1  ;;  %v2218_v2 = vmul.f32 %v2216_v54, %v2216_v54 }
 0xa77   : > { %v2217_v3 = vsub.f32 %v2200_v57, %v2215_v63  ;;  %v2220_v60 = vsel %vm541_vm3, %v2218_v2, 0.0 }
 0xa78   : > { %2221 = vadd.xlane.f32.xlu1 %v2220_v60 }
 0xa79   : > { %v2219_v4 = vmul.f32 %v2217_v3, %v2217_v3 }
 0xa7b   : > { %v2223_v5 = vsel %vm541_vm3, %v2219_v4, 0.0 }
 0xa7c   : > { %2224 = vadd.xlane.f32.xlu1 %v2223_v5 }
 0xb01   : > { %v2222_v13 = vpop.xlane.xlu1 %2221 }
 0xb02   : > { %v2226_v14 = vmul.f32 0.015625, %v2222_v13 }
 0xb04   : > { %v2228_v16 = vadd.f32 1e-05, %v2226_v14 }
 0xb05   : > { %v2225_v17 = vpop.xlane.xlu1 %2224 }
 0xb06   : > { %2988 = vrsqrt.f32 %v2228_v16  ;;  %v2227_v18 = vmul.f32 0.015625, %v2225_v17 }
 0xb08   : > { %v2229_v12 = vadd.f32 1e-05, %v2227_v18 }
 0xb0a   : > { %2990 = vrsqrt.f32 %v2229_v12 }
 0xb13   : > { %v2989_v19 = vpop.eup %2988 }
 0xb14   : > { %v2232_v15 = vmul.f32 %v2989_v19, %v2216_v54 }
 0xb16   : > { %v2238_v24 = vmul.f32 %v2237_v20, %v2232_v15 }
 0xb17   : > { %v2991_v21 = vpop.eup %2990 }
 0xb18   : > { %v2233_v23 = vmul.f32 %v2991_v21, %v2217_v3  ;;  %v2244_v28 = vadd.f32 %v2243_v25, %v2238_v24 }
 0xb1a   : > { %v2239_v27 = vmul.f32 %v2237_v20, %v2233_v23 }
 0xb1c   : > { %v2245_v29 = vadd.f32 %v2243_v25, %v2239_v27 }
 0xb1e   : > { %v2246_v30 = vpack.c.bf16 %v2245_v29, %v2244_v28 }
 0xb20   : > { %2790 = vmatmul.mubr.msk.bf16.vlgmr.msra.gmra.mxu0 %vm541_vm3, %v2246_v30 }
 0xbe0   : > { %v2320_v22 = vpop.f32.mrf.mxu0 }
 0xbe1   : > { %v2321_v31 = vadd.f32 %v2320_v22, %v2258_v26 }
 0xbe2   : > { %v2791_v32 = vpop.f32.mrf.mxu0 }
 0xbe3   : > { %2327 = vst.msk [vmem:[%s3464_s10] sm:$0xff] %vm541_vm3, %v2321_v31 }
 0xbe4   : > { %v2323_v41 = vpop.f32.mrf.mxu0 }
 0xbe5   : > { %v2324_v34 = vadd.f32 %v2323_v41, %v2258_v26 }
 0xbe6   : > { %v2792_v46 = vpop.f32.mrf.mxu0 }
 0xbe7   : > { %2328 = vst.msk [vmem:[%s3464_s10 + $0x8] sm:$0xff] %vm541_vm3, %v2324_v34 }
 0xbe8 PF: > { %s20_s15 = sadd.s32 1, %s3014_s15   ;;  %s3470_s13 = sld [smem:[#allocation4_spill]] }
 0xbe9   : > { %p17_p7 = scmp.ge.s32.totalorder %s20_s15, 4   ;;  %s3471_s14 = sld [smem:[#allocation5_spill]] }
 0xbeb   :  { %19 = sbr.rel (!%p17_p7) target bundleno = 2 (0x2), region = 116 }

</bundles_post_ra>
